<compile_context>
chip_gen: v5e
topology: v5e:2x2
jax: 0.10.0
libtpu: 0.0.40
codegen_flags: <defaults>
</compile_context>

<pallas_src>
import functools
import math

import jax
import jax.numpy as jnp
from jax.experimental import pallas as pl
from jax.experimental.pallas import tpu as pltpu


def _round_up(n, m):
    return ((n + m - 1) // m) * m


def _flash_self_attn_kernel(x_q_ref, x_kv_ref, wqkv_ref, bias_ref, o_ref,
                            q_scr, m_scr, l_scr, acc_scr,
                            *, op, inv_scale, block_kv, seq_len, needs_mask):
    """One (batch, q_tile, kv_tile) grid step: fused QKV projection + attention."""
    ki = pl.program_id(2)

    @pl.when(ki == 0)
    def _init():
        # Q projection for this query tile — done once, reused over all kv tiles.
        q = jax.lax.dot_general(
            x_q_ref[...], wqkv_ref[:, 0:op],
            dimension_numbers=(((1,), (0,)), ((), ())),
            preferred_element_type=jnp.float32)
        q = (q + bias_ref[0:1, :]) * inv_scale          # fold 1/sqrt(O) into Q
        q_scr[...] = q.astype(q_scr.dtype)
        m_scr[...] = jnp.full_like(m_scr, -jnp.inf)
        l_scr[...] = jnp.zeros_like(l_scr)
        acc_scr[...] = jnp.zeros_like(acc_scr)

    # Fused K|V projection for this kv tile: ONE [tk,H] @ [H,2*O] MXU op.
    kv = jax.lax.dot_general(
        x_kv_ref[...], wqkv_ref[:, op:],
        dimension_numbers=(((1,), (0,)), ((), ())),
        preferred_element_type=jnp.float32)
    k = kv[:, 0:op].astype(jnp.bfloat16)                # K bias dropped: softmax-invariant
    v = (kv[:, op:] + bias_ref[1:2, :]).astype(jnp.bfloat16)

    # scores = Q @ K^T, contracting last dims — no materialized transpose of K.
    s = jax.lax.dot_general(
        q_scr[...], k,
        dimension_numbers=(((1,), (1,)), ((), ())),
        preferred_element_type=jnp.float32)

    if needs_mask:  # static Python bool: emitted only when the sequence was padded
        col = ki * block_kv + jax.lax.broadcasted_iota(jnp.int32, s.shape, 1)
        s = jnp.where(col < seq_len, s, -jnp.inf)

    # Online (flash) softmax update, all in f32.
    m_prev = m_scr[...]
    m_new = jnp.maximum(m_prev, jnp.max(s, axis=-1, keepdims=True))
    alpha = jnp.exp(m_prev - m_new)
    p = jnp.exp(s - m_new)
    l_scr[...] = alpha * l_scr[...] + jnp.sum(p, axis=-1, keepdims=True)
    acc_scr[...] = alpha * acc_scr[...] + jax.lax.dot_general(
        p.astype(jnp.bfloat16), v,
        dimension_numbers=(((1,), (0,)), ((), ())),
        preferred_element_type=jnp.float32)
    m_scr[...] = m_new

    @pl.when(ki == pl.num_programs(2) - 1)
    def _finalize():
        o_ref[...] = (acc_scr[...] *
                      pl.reciprocal(l_scr[...], approx=True)).astype(o_ref.dtype)


def self_attention_layer(x, wq, wk, wv, bq, bk, bv, *,
                         block_q=256, block_kv=512,
                         vmem_limit_bytes=32 * 1024 * 1024):
    """x: [S, H] or [B, S, H]; wq/wk/wv: [H, O]; biases: [1, O] -> same-rank output [.., S, O]."""
    del bk  # unused: softmax is invariant to the per-row constant the K bias adds
    squeeze_batch = (x.ndim == 2)
    if squeeze_batch:
        x = x[None]
    B, S, H = x.shape
    O = wq.shape[1]
    inv_scale = 1.0 / math.sqrt(float(O))

    # Lane-dense padding of the feature dims (exact: zero padding, sliced off below).
    Hp = _round_up(H, 128)
    Op = _round_up(O, 128)

    # Tile sizes along the sequence. Round S up to a 16-multiple (bf16 sublane
    # packing); clamp tiles for small S, keep tk a multiple of tq otherwise.
    S16 = _round_up(S, 16)
    if S16 <= block_q:
        tq = tk = S16
    else:
        tq = block_q
        tk = max(tq, (min(block_kv, _round_up(S16, tq)) // tq) * tq)
    Sp = _round_up(S16, tk)
    needs_mask = (Sp != S)

    # Pad x -> [B, Sp, Hp] bf16.
    xp = jnp.zeros((B, Sp, Hp), jnp.bfloat16)
    xp = xp.at[:, :S, :H].set(x.astype(jnp.bfloat16))

    # Fused, padded QKV weight: [Hp, 3*Op] = [Wq | Wk | Wv], bf16 on the MXU path.
    def pad_w(w):
        wp = jnp.zeros((Hp, Op), jnp.float32)
        return wp.at[:H, :O].set(w.astype(jnp.float32))

    wqkv = jnp.concatenate([pad_w(wq), pad_w(wk), pad_w(wv)],
                           axis=1).astype(jnp.bfloat16)

    # Tiny resident bias block (f32): row 0 = bq, row 1 = bv.
    def pad_b(b):
        bp = jnp.zeros((1, Op), jnp.float32)
        return bp.at[:, :O].set(jnp.asarray(b, jnp.float32).reshape(1, -1))

    bias = jnp.concatenate([pad_b(bq), pad_b(bv)], axis=0)   # [2, Op]

    grid = (B, Sp // tq, Sp // tk)
    kernel = functools.partial(
        _flash_self_attn_kernel,
        op=Op, inv_scale=inv_scale, block_kv=tk, seq_len=S, needs_mask=needs_mask)

    out = pl.pallas_call(
        kernel,
        out_shape=jax.ShapeDtypeStruct((B, Sp, Op), jnp.float32),
        grid_spec=pltpu.PrefetchScalarGridSpec(
            num_scalar_prefetch=0,
            grid=grid,
            in_specs=[
                # query-side x tile: constant across the kv axis -> no re-DMA per kv step
                pl.BlockSpec((None, tq, Hp), lambda b, qi, ki: (b, qi, 0)),
                # kv-side x tile
                pl.BlockSpec((None, tk, Hp), lambda b, qi, ki: (b, ki, 0)),
                # fused QKV weights: constant index_map -> VMEM-resident, one DMA total
                pl.BlockSpec((Hp, 3 * Op), lambda b, qi, ki: (0, 0)),
                # small resident bias block
                pl.BlockSpec((2, Op), lambda b, qi, ki: (0, 0)),
            ],
            out_specs=pl.BlockSpec((None, tq, Op), lambda b, qi, ki: (b, qi, 0)),
            scratch_shapes=[
                pltpu.VMEM((tq, Op), jnp.bfloat16),   # cached (scaled, biased) Q tile
                pltpu.VMEM((tq, 1), jnp.float32),     # running max m
                pltpu.VMEM((tq, 1), jnp.float32),     # running denom l
                pltpu.VMEM((tq, Op), jnp.float32),    # output accumulator
            ]),
        compiler_params=pltpu.CompilerParams(
            dimension_semantics=("parallel", "parallel", "arbitrary"),
            vmem_limit_bytes=vmem_limit_bytes),
    )(xp, xp, wqkv, bias)

    out = out[:, :S, :O]
    if squeeze_batch:
        out = out[0]
    return out


def init_params(key, hidden_size, output_size):
    """Deterministic nn.Linear-style init: U(-1/sqrt(H), 1/sqrt(H))."""
    ks = jax.random.split(key, 6)
    bound = 1.0 / math.sqrt(hidden_size)
    u = lambda k, shape: jax.random.uniform(k, shape, jnp.float32, -bound, bound)
    # PyTorch Linear stores weight as [out, in]; we pre-transpose to [in, out].
    wq = u(ks[0], (hidden_size, output_size))
    wk = u(ks[1], (hidden_size, output_size))
    wv = u(ks[2], (hidden_size, output_size))
    bq = u(ks[3], (1, output_size))
    bk = u(ks[4], (1, output_size))
    bv = u(ks[5], (1, output_size))
    return wq, wk, wv, bq, bk, bv


def reference(x, wq, wk, wv, bq, bk, bv):
    """Plain-JAX f32 reference replicating the PyTorch forward (Q K^T attention)."""
    q = x @ wq + bq
    k = x @ wk + bk
    v = x @ wv + bv
    scale = jnp.sqrt(jnp.asarray(wq.shape[1], jnp.float32))
    s = jnp.einsum('...sd,...td->...st', q, k) / scale
    w = jax.nn.softmax(s, axis=-1)
    return jnp.einsum('...st,...td->...sd', w, v)


if __name__ == "__main__":
    key = jax.random.PRNGKey(0)

    def run_case(batch, seq, hidden, output, case_key):
        kx, kp = jax.random.split(case_key)
        shape = (seq, hidden) if batch is None else (batch, seq, hidden)
        x = jax.random.normal(kx, shape, jnp.float32)
        wq, wk, wv, bq, bk, bv = init_params(kp, hidden, output)
        out = jax.block_until_ready(
            self_attention_layer(x, wq, wk, wv, bq, bk, bv))
        ref = reference(x, wq, wk, wv, bq, bk, bv)
        assert out.shape == ref.shape, (out.shape, ref.shape)
        # bf16 MXU path + approx reciprocal -> loosened tolerance vs f32 reference.
        assert jnp.allclose(out, ref, atol=5e-2, rtol=5e-2), (
            f"mismatch vs reference: max abs err {jnp.max(jnp.abs(out - ref))}")

    k1, k2, k3 = jax.random.split(key, 3)
    run_case(2, 128, 32, 32, k1)    # batched, lane-padded H/O, no seq padding
    run_case(None, 8, 32, 32, k2)   # 2-D input matching the PyTorch forward; padded seq tail
    run_case(1, 50, 48, 40, k3)     # exercises seq masking + non-128 H/O padding

    print("KERNEL_OK")
</pallas_src>

<mosaic_0001>
module attributes {stable_mosaic.version = 11 : i64} {
  func.func @_flash_self_attn_kernel(%arg0: i32, %arg1: i32, %arg2: i32, %arg3: memref<1x128x128xbf16, #tpu.memory_space<vmem>>, %arg4: memref<1x128x128xbf16, #tpu.memory_space<vmem>>, %arg5: memref<128x384xbf16, #tpu.memory_space<vmem>>, %arg6: memref<2x128xf32, #tpu.memory_space<vmem>>, %arg7: memref<1x128x128xf32, #tpu.memory_space<vmem>>, %arg8: memref<128x128xbf16, #tpu.memory_space<vmem>>, %arg9: memref<128x1xf32, #tpu.memory_space<vmem>>, %arg10: memref<128x1xf32, #tpu.memory_space<vmem>>, %arg11: memref<128x128xf32, #tpu.memory_space<vmem>>) attributes {dimension_semantics = [#tpu.dimension_semantics<parallel>, #tpu.dimension_semantics<parallel>, #tpu.dimension_semantics<arbitrary>], iteration_bounds = array<i64: 2, 1, 1>, scalar_prefetch = 0 : i64, scratch_operands = 4 : i64, tpu.core_type = #tpu.core_type<tc>, window_params = [{transform_indices = @transform_0, window_bounds = array<i64: 1, 128, 128>}, {transform_indices = @transform_1, window_bounds = array<i64: 1, 128, 128>}, {pipeline_mode = #tpu.pipeline_mode<synchronous>, transform_indices = @transform_2, window_bounds = array<i64: 128, 384>}, {pipeline_mode = #tpu.pipeline_mode<synchronous>, transform_indices = @transform_3, window_bounds = array<i64: 2, 128>}, {transform_indices = @transform_4, window_bounds = array<i64: 1, 128, 128>}]} {
    %c0_i32 = arith.constant 0 : i32
    %0 = arith.cmpi eq, %arg2, %c0_i32 : i32
    %1 = arith.extui %0 : i1 to i32
    %c0_i32_0 = arith.constant 0 : i32
    %2 = arith.cmpi ne, %1, %c0_i32_0 : i32
    scf.if %2 {
      %c0_25 = arith.constant 0 : index
      %c0_26 = arith.constant 0 : index
      %c0_27 = arith.constant 0 : index
      %42 = vector.load %arg3[%c0_25, %c0_26, %c0_27] : memref<1x128x128xbf16, #tpu.memory_space<vmem>>, vector<1x128x128xbf16>
      %43 = vector.shape_cast %42 : vector<1x128x128xbf16> to vector<128x128xbf16>
      %c0_28 = arith.constant 0 : index
      %c0_29 = arith.constant 0 : index
      %44 = vector.load %arg5[%c0_28, %c0_29] : memref<128x384xbf16, #tpu.memory_space<vmem>>, vector<128x128xbf16>
      %cst_30 = arith.constant dense<0.000000e+00> : vector<128x128xf32>
      %45 = tpu.matmul %43, %44, %cst_30 {dimension_numbers = #tpu.dot_dimension_numbers<[1], [0], [0], [1], [0, 0, 1, 1], [], []>} : vector<128x128xbf16>, vector<128x128xbf16>, vector<128x128xf32> -> vector<128x128xf32>
      %c0_31 = arith.constant 0 : index
      %c0_32 = arith.constant 0 : index
      %46 = vector.load %arg6[%c0_31, %c0_32] : memref<2x128xf32, #tpu.memory_space<vmem>>, vector<1x128xf32>
      %47 = vector.broadcast %46 : vector<1x128xf32> to vector<128x128xf32>
      %48 = arith.addf %45, %47 : vector<128x128xf32>
      %cst_33 = arith.constant 0.176776692 : f32
      %49 = vector.broadcast %cst_33 : f32 to vector<128x128xf32>
      %50 = arith.mulf %48, %49 : vector<128x128xf32>
      %51 = arith.truncf %50 : vector<128x128xf32> to vector<128x128xbf16>
      %c0_34 = arith.constant 0 : index
      %c0_35 = arith.constant 0 : index
      %52 = vector.load %arg8[%c0_34, %c0_35] : memref<128x128xbf16, #tpu.memory_space<vmem>>, vector<128x128xbf16>
      tpu.vector_store %arg8[%c0_34, %c0_35], %51 {strides = array<i32>} : memref<128x128xbf16, #tpu.memory_space<vmem>>, vector<128x128xbf16>,
      %cst_36 = arith.constant 0xFF800000 : f32
      %53 = vector.broadcast %cst_36 : f32 to vector<128x1xf32>
      %c0_37 = arith.constant 0 : index
      %c0_38 = arith.constant 0 : index
      %54 = vector.load %arg9[%c0_37, %c0_38] : memref<128x1xf32, #tpu.memory_space<vmem>>, vector<128x1xf32>
      tpu.vector_store %arg9[%c0_37, %c0_38], %53 {strides = array<i32>} : memref<128x1xf32, #tpu.memory_space<vmem>>, vector<128x1xf32>,
      %cst_39 = arith.constant 0.000000e+00 : f32
      %55 = vector.broadcast %cst_39 : f32 to vector<128x1xf32>
      %c0_40 = arith.constant 0 : index
      %c0_41 = arith.constant 0 : index
      %56 = vector.load %arg10[%c0_40, %c0_41] : memref<128x1xf32, #tpu.memory_space<vmem>>, vector<128x1xf32>
      tpu.vector_store %arg10[%c0_40, %c0_41], %55 {strides = array<i32>} : memref<128x1xf32, #tpu.memory_space<vmem>>, vector<128x1xf32>,
      %cst_42 = arith.constant 0.000000e+00 : f32
      %57 = vector.broadcast %cst_42 : f32 to vector<128x128xf32>
      %c0_43 = arith.constant 0 : index
      %c0_44 = arith.constant 0 : index
      %58 = vector.load %arg11[%c0_43, %c0_44] : memref<128x128xf32, #tpu.memory_space<vmem>>, vector<128x128xf32>
      tpu.vector_store %arg11[%c0_43, %c0_44], %57 {strides = array<i32>} : memref<128x128xf32, #tpu.memory_space<vmem>>, vector<128x128xf32>,
    } else {
    }
    %c0 = arith.constant 0 : index
    %c0_1 = arith.constant 0 : index
    %c0_2 = arith.constant 0 : index
    %3 = vector.load %arg4[%c0, %c0_1, %c0_2] : memref<1x128x128xbf16, #tpu.memory_space<vmem>>, vector<1x128x128xbf16>
    %4 = vector.shape_cast %3 : vector<1x128x128xbf16> to vector<128x128xbf16>
    %c0_3 = arith.constant 0 : index
    %c128 = arith.constant 128 : index
    %5 = vector.load %arg5[%c0_3, %c128] : memref<128x384xbf16, #tpu.memory_space<vmem>>, vector<128x256xbf16>
    %cst = arith.constant dense<0.000000e+00> : vector<128x256xf32>
    %6 = tpu.matmul %4, %5, %cst {dimension_numbers = #tpu.dot_dimension_numbers<[1], [0], [0], [1], [0, 0, 1, 1], [], []>} : vector<128x128xbf16>, vector<128x256xbf16>, vector<128x256xf32> -> vector<128x256xf32>
    %7 = vector.extract_strided_slice %6 {offsets = [0, 0], sizes = [128, 128], strides = [1, 1]} : vector<128x256xf32> to vector<128x128xf32>
    %8 = arith.truncf %7 : vector<128x128xf32> to vector<128x128xbf16>
    %9 = vector.extract_strided_slice %6 {offsets = [0, 128], sizes = [128, 128], strides = [1, 1]} : vector<128x256xf32> to vector<128x128xf32>
    %c1 = arith.constant 1 : index
    %c0_4 = arith.constant 0 : index
    %10 = vector.load %arg6[%c1, %c0_4] : memref<2x128xf32, #tpu.memory_space<vmem>>, vector<1x128xf32>
    %11 = vector.broadcast %10 : vector<1x128xf32> to vector<128x128xf32>
    %12 = arith.addf %9, %11 : vector<128x128xf32>
    %13 = arith.truncf %12 : vector<128x128xf32> to vector<128x128xbf16>
    %c0_5 = arith.constant 0 : index
    %c0_6 = arith.constant 0 : index
    %14 = vector.load %arg8[%c0_5, %c0_6] : memref<128x128xbf16, #tpu.memory_space<vmem>>, vector<128x128xbf16>
    %cst_7 = arith.constant dense<0.000000e+00> : vector<128x128xf32>
    %15 = tpu.matmul %14, %8, %cst_7 {dimension_numbers = #tpu.dot_dimension_numbers<[1], [1], [0], [0], [0, 0, 1, 0], [], []>} : vector<128x128xbf16>, vector<128x128xbf16>, vector<128x128xf32> -> vector<128x128xf32>
    %c0_8 = arith.constant 0 : index
    %c0_9 = arith.constant 0 : index
    %16 = vector.load %arg9[%c0_8, %c0_9] : memref<128x1xf32, #tpu.memory_space<vmem>>, vector<128x1xf32>
    %cst_10 = arith.constant dense<0xFF800000> : vector<128xf32>
    %17 = vector.multi_reduction <maximumf>, %15, %cst_10 [1] : vector<128x128xf32> to vector<128xf32>
    %18 = vector.shape_cast %17 : vector<128xf32> to vector<128x1xf32>
    %19 = arith.maximumf %16, %18 : vector<128x1xf32>
    %20 = arith.subf %16, %19 : vector<128x1xf32>
    %21 = math.exp %20 : vector<128x1xf32>
    %22 = vector.broadcast %19 : vector<128x1xf32> to vector<128x128xf32>
    %23 = arith.subf %15, %22 : vector<128x128xf32>
    %24 = math.exp %23 : vector<128x128xf32>
    %c0_11 = arith.constant 0 : index
    %c0_12 = arith.constant 0 : index
    %25 = vector.load %arg10[%c0_11, %c0_12] : memref<128x1xf32, #tpu.memory_space<vmem>>, vector<128x1xf32>
    %26 = arith.mulf %21, %25 : vector<128x1xf32>
    %cst_13 = arith.constant dense<0.000000e+00> : vector<128xf32>
    %27 = vector.multi_reduction <add>, %24, %cst_13 [1] : vector<128x128xf32> to vector<128xf32>
    %28 = vector.shape_cast %27 : vector<128xf32> to vector<128x1xf32>
    %29 = arith.addf %26, %28 : vector<128x1xf32>
    %c0_14 = arith.constant 0 : index
    %c0_15 = arith.constant 0 : index
    %30 = vector.load %arg10[%c0_14, %c0_15] : memref<128x1xf32, #tpu.memory_space<vmem>>, vector<128x1xf32>
    tpu.vector_store %arg10[%c0_14, %c0_15], %29 {strides = array<i32>} : memref<128x1xf32, #tpu.memory_space<vmem>>, vector<128x1xf32>,
    %c0_16 = arith.constant 0 : index
    %c0_17 = arith.constant 0 : index
    %31 = vector.load %arg11[%c0_16, %c0_17] : memref<128x128xf32, #tpu.memory_space<vmem>>, vector<128x128xf32>
    %32 = vector.broadcast %21 : vector<128x1xf32> to vector<128x128xf32>
    %33 = arith.mulf %32, %31 : vector<128x128xf32>
    %34 = arith.truncf %24 : vector<128x128xf32> to vector<128x128xbf16>
    %cst_18 = arith.constant dense<0.000000e+00> : vector<128x128xf32>
    %35 = tpu.matmul %34, %13, %cst_18 {dimension_numbers = #tpu.dot_dimension_numbers<[1], [0], [0], [1], [0, 0, 1, 1], [], []>} : vector<128x128xbf16>, vector<128x128xbf16>, vector<128x128xf32> -> vector<128x128xf32>
    %36 = arith.addf %33, %35 : vector<128x128xf32>
    %c0_19 = arith.constant 0 : index
    %c0_20 = arith.constant 0 : index
    %37 = vector.load %arg11[%c0_19, %c0_20] : memref<128x128xf32, #tpu.memory_space<vmem>>, vector<128x128xf32>
    tpu.vector_store %arg11[%c0_19, %c0_20], %36 {strides = array<i32>} : memref<128x128xf32, #tpu.memory_space<vmem>>, vector<128x128xf32>,
    %c0_21 = arith.constant 0 : index
    %c0_22 = arith.constant 0 : index
    %38 = vector.load %arg9[%c0_21, %c0_22] : memref<128x1xf32, #tpu.memory_space<vmem>>, vector<128x1xf32>
    tpu.vector_store %arg9[%c0_21, %c0_22], %19 {strides = array<i32>} : memref<128x1xf32, #tpu.memory_space<vmem>>, vector<128x1xf32>,
    %c0_i32_23 = arith.constant 0 : i32
    %39 = arith.cmpi eq, %arg2, %c0_i32_23 : i32
    %40 = arith.extui %39 : i1 to i32
    %c0_i32_24 = arith.constant 0 : i32
    %41 = arith.cmpi ne, %40, %c0_i32_24 : i32
    scf.if %41 {
      %c0_25 = arith.constant 0 : index
      %c0_26 = arith.constant 0 : index
      %42 = vector.load %arg11[%c0_25, %c0_26] : memref<128x128xf32, #tpu.memory_space<vmem>>, vector<128x128xf32>
      %c0_27 = arith.constant 0 : index
      %c0_28 = arith.constant 0 : index
      %43 = vector.load %arg10[%c0_27, %c0_28] : memref<128x1xf32, #tpu.memory_space<vmem>>, vector<128x1xf32>
      %44 = tpu.reciprocal %43 {approx = true} : vector<128x1xf32> -> vector<128x1xf32>
      %45 = vector.broadcast %44 : vector<128x1xf32> to vector<128x128xf32>
      %46 = arith.mulf %42, %45 : vector<128x128xf32>
      %c0_29 = arith.constant 0 : index
      %c0_30 = arith.constant 0 : index
      %c0_31 = arith.constant 0 : index
      %47 = vector.load %arg7[%c0_29, %c0_30, %c0_31] : memref<1x128x128xf32, #tpu.memory_space<vmem>>, vector<1x128x128xf32>
      %48 = vector.shape_cast %47 : vector<1x128x128xf32> to vector<128x128xf32>
      %49 = vector.shape_cast %46 : vector<128x128xf32> to vector<1x128x128xf32>
      tpu.vector_store %arg7[%c0_29, %c0_30, %c0_31], %49 {strides = array<i32>} : memref<1x128x128xf32, #tpu.memory_space<vmem>>, vector<1x128x128xf32>,
    } else {
    }
    return
  }
  func.func @transform_0(%arg0: i32, %arg1: i32, %arg2: i32) -> (i32, i32, i32) {
    %c0_i32 = arith.constant 0 : i32
    %c0_i32_0 = arith.constant 0 : i32
    return %arg0, %arg1, %c0_i32 : i32, i32, i32
  }
  func.func @transform_1(%arg0: i32, %arg1: i32, %arg2: i32) -> (i32, i32, i32) {
    %c0_i32 = arith.constant 0 : i32
    %c0_i32_0 = arith.constant 0 : i32
    return %arg0, %arg2, %c0_i32 : i32, i32, i32
  }
  func.func @transform_2(%arg0: i32, %arg1: i32, %arg2: i32) -> (i32, i32) {
    %c0_i32 = arith.constant 0 : i32
    %c0_i32_0 = arith.constant 0 : i32
    %c0_i32_1 = arith.constant 0 : i32
    return %c0_i32, %c0_i32_0 : i32, i32
  }
  func.func @transform_3(%arg0: i32, %arg1: i32, %arg2: i32) -> (i32, i32) {
    %c0_i32 = arith.constant 0 : i32
    %c0_i32_0 = arith.constant 0 : i32
    %c0_i32_1 = arith.constant 0 : i32
    return %c0_i32, %c0_i32_0 : i32, i32
  }
  func.func @transform_4(%arg0: i32, %arg1: i32, %arg2: i32) -> (i32, i32, i32) {
    %c0_i32 = arith.constant 0 : i32
    %c0_i32_0 = arith.constant 0 : i32
    return %arg0, %arg1, %c0_i32 : i32, i32, i32
  }
}

</mosaic_0001>

<bundles_post_ra>
// kernel: tpu_custom_call.1
= control target key start
LH: loop header
LB: loop body
LE: loop exit
PB: predicated region body
PF: predicated region fallthrough
CT: control target
= control target key end

     0   :  { %s3216_s0 = inlined_call_operand.hbm [shape: bf16[2,128,128], index: 0, kind: input, shape index: {}]   ;;  %s3217_s1 = inlined_call_operand.hbm [shape: bf16[2,128,128], index: 1, kind: input, shape index: {}]   ;;  %s3218_s2 = inlined_call_operand.hbm [shape: bf16[128,384], index: 2, kind: input, shape index: {}]   ;;  %s3219_s3 = inlined_call_operand.vmem [shape: f32[2,128], index: 3, kind: input, shape index: {}]   ;;  %s3220_s4 = inlined_call_operand.hbm [shape: f32[2,128,128], index: 4, kind: output, shape index: {}]  }
   0x1   :  { %3224 = sst [smem:[#allocation21_spill]] %s3218_s2 }
   0x2   :  { %9 = vsyncpa [#allocation7], 0 }
   0x3   :  { %11 = vsyncpa [#allocation7 + $0x1], 0 }
   0x4   :  { %12 = vsyncpa [#allocation10], 0 }
   0x5   :  { %14 = vsyncpa [#allocation10 + $0x1], 0 }
   0x6   :  { %15 = vsyncpa [#allocation8], 0 }
   0x7   :  { %17 = vsyncpa [#allocation8 + $0x1], 0  ;;  %s2585_s15 = smov 0   ;;  %s2587_s16 = smov 0  }
   0x8   :  { %s2589_s17 = smov 0   ;;  %s2591_s18 = smov 0  }
   0x9   :  { %s2593_s19 = smov 0   ;;  %s2595_s20 = smov 0  }
   0xa LB: > { %3225 = sst [smem:[#allocation17_spill]] %s2536_s17  ;;  %s2616_s21 = sadd.s32 4294967295, %s2548_s20   ;;  %s2548_s20 = sphi %s2595_s20, %s23_s20   ;;  %s2544_s19 = sphi %s2593_s19, %s3238_s19   ;;  %s2540_s18 = sphi %s2591_s18, %s3237_s18   ;;  %s2536_s17 = sphi %s2589_s17, %s3236_s17   ;;  %s2532_s16 = sphi %s2587_s16, %s3240_s16   ;;  %s2528_s15 = sphi %s2585_s15, %s3239_s15  }
   0xb   : > { %3226 = sst [smem:[#allocation18_spill]] %s2544_s19  ;;  %s1854_s22 = sadd.s32 4294967294, %s2548_s20  }
   0xc   : > { %p64_p0 = scmp.ne.s32.totalorder %s2532_s16, %s2528_s15  ;;  %p65_p1 = scmp.eq.s32.totalorder %s2616_s21, 0 }
   0xd   : > { %p160_p2 = scmp.eq.s32.totalorder %s2616_s21, 1  ;;  %p166_p3 = scmp.eq.s32.totalorder %s1854_s22, 1 }
   0xe   : > { %p2625_p4 = por %p65_p1, %p64_p0  ;;  %p1855_p5 = scmp.ge.s32.totalorder %s2548_s20, 1 }
   0xf   : > { %p2630_p6 = por %p166_p3, %p64_p0  ;;  %p173_p7 = scmp.lt.s32.totalorder %s2548_s20, 3 }
  0x10   : > { %s3229_s2 = sld [smem:[#allocation21_spill]]  ;;  %s2550_s29 = smov [#allocation11]  }
  0x11   : > { %p2638_p8 = pnand %p1855_p5, %p173_p7  ;;  %s186_s30 = sshll.u32 %s2550_s29, 4  ;;  %s187_s30 = int_to_ptr.vmem [resolvable:$true] %s186_s30 }
  0x12   : > { %p1857_p11 = scmp.ge.s32.totalorder %s2548_s20, 2  ;;  %s2551_s5 = smov 192  }
  0x13   : > { %p2190_p9 = pneg %p2638_p8  ;;  %s2552_s6 = smov 12  }
  0x14   : > { %s42_s7 = sadd.s32 1, %s2544_s19  ;;  %s51_s8 = sadd.s32 1, %s2536_s17 }
  0x15   : > { %p2191_p10 = pnand %p2190_p9, %p65_p1  ;;  %p44_p12 = scmp.ge.s32.totalorder %s42_s7, 2 }
  0x16   : > { %s184_s27 = sshll.u32 %s3229_s2, 4  ;;  %p58_p13 = scmp.ne.s32.totalorder %s2536_s17, %s2532_s16  ;;  %s185_s27 = int_to_ptr.hbm [resolvable:$true] %s184_s27 }
  0x17   : > { %2193 = dma.hbm_to_vmem [thread:$0]  (!%p2191_p10), %s185_s27, 3072, %s187_s30, [#allocation10], %s2551_s5, %s2551_s5, %s2552_s6  }
  0x18   : > { %p59_p0 = scmp.eq.s32.totalorder %s2548_s20, 0  ;;  %s3242_s7 = smov (%p44_p12, %s42_s7), 0 }
  0x19   : > { %3231 = sst [smem:[#allocation19_spill]] %s3242_s7  ;;  %p2660_p5 = por %p160_p2, %p58_p13 }
  0x1a   : > { %p2654_p3 = por %p59_p0, %p58_p13  ;;  %s46_s11 = ssub.s32 %s2544_s19, %s3242_s7 }
  0x1b   : > { %p2206_p7 = scmp.lt.s32.totalorder %s2548_s20, 2  ;;  %p49_p9 = scmp.eq.s32.totalorder %s46_s11, 0 }
  0x1c   : > { %s203_s12 = sand.u32 1, %s2536_s17   ;;  %s2066_s22 = sshll.u32 %s2544_s19, 6 }
  0x1d   : > { %s1858_s13 = sshll.u32 %s203_s12, 6  ;;  %s214_s27 = scalar_lea.hbm %s3216_s0, %s2066_s22 }
  0x1e   : > { %s2669_s14 = scalar_select %p49_p9, %s2536_s17, %s51_s8  }
  0x1f   : > { %s207_s29 = scalar_lea.vmem [#allocation6], %s1858_s13  ;;  %s215_s5 = sshll.u32 %s214_s27, 4  ;;  %s216_s5 = int_to_ptr.hbm [resolvable:$true] %s215_s5 }
  0x20   : > { %3234 = sst [smem:[#allocation20_spill]] %s2669_s14  ;;  %s217_s30 = sshll.u32 %s207_s29, 4  ;;  %s218_s30 = int_to_ptr.vmem [resolvable:$true] %s217_s30 }
  0x21   : > { %p2195_p2 = pnand %p2206_p7, %p2654_p3  ;;  %s204_s6 = scalar_lea.sflag [#allocation7], %s203_s12 }
  0x22   : > { %s2553_s2 = smov 64   ;;  %s2554_s11 = smov 4  }
  0x23   : > { %2197 = dma.hbm_to_vmem [thread:$0]  (!%p2195_p2), %s216_s5, 1024, %s218_s30, %s204_s6, %s2553_s2, %s2553_s2, %s2554_s11  }
  0x24   : > { %s238_s19 = scalar_lea.hbm %s3217_s1, %s2066_s22  ;;  %s231_s14 = scalar_lea.vmem [#allocation9], %s1858_s13 }
  0x25   : > { %s241_s17 = sshll.u32 %s231_s14, 4  ;;  %s239_s25 = sshll.u32 %s238_s19, 4  ;;  %s242_s17 = int_to_ptr.vmem [resolvable:$true] %s241_s17  ;;  %s240_s25 = int_to_ptr.hbm [resolvable:$true] %s239_s25 }
  0x26   : > { %s227_s26 = sand.u32 1, %s2548_s20   ;;  %253 = sbr.rel (%p2638_p8) target bundleno = 1177 (0x499), region = 36 }
  0x27   : > { %s228_s29 = scalar_lea.sflag [#allocation10], %s227_s26  ;;  %s2684_s9 = sand.u32 (!%p2638_p8), 1, %s2532_s16  }
  0x28   : > { %2200 = dma.hbm_to_vmem [thread:$0]  (!%p2195_p2), %s240_s25, 1024, %s242_s17, %s228_s29, %s2553_s2, %s2553_s2, %s2554_s11  }
  0x29   : > { %s1865_s12 = sshll.u32 (!%p2638_p8), %s2684_s9, 6  ;;  %s256_s7 = scalar_lea.sflag (!%p2638_p8), [#allocation7], %s2684_s9 }
  0x2a   : > { %s2688_s22 = scalar_lea.vmem (!%p2638_p8), [#allocation6], %s1865_s12 }
  0x2b   : > { %2511 = dma.done.wait (%p2625_p4), %s256_s7, 1024  }
  0x2c   : > { %2513 = vsyncadd (%p2625_p4), %s256_s7, 4294966272  ;;  %s265_s2 = sand.u32 1, %s2616_s21   ;;  %s2695_s19 = scalar_lea.vmem [#allocation9], %s1865_s12 }
  0x2d   : > { %s266_s17 = scalar_lea.sflag [#allocation10], %s265_s2 }
  0x2e   : > { %2515 = dma.done.wait (%p2625_p4), %s266_s17, 1024  }
  0x2f   : > { %2517 = vsyncadd (%p2625_p4), %s266_s17, 4294966272 }
  0x30   : > { %2519 = dma.done.wait (%p65_p1), [#allocation10], 3072  }
  0x31   : > { %2521 = vsyncadd (%p65_p1), [#allocation10], 4294964224  ;;  %v1931_v0 = vld [vmem:[#allocation11 + $0xa8] sm:$0xf]  ;;  %v2083_v1 = vld [vmem:[#allocation11 + $0xb0] sm:$0xf0] }
  0x32   : > { %v1927_v2 = vld [vmem:[#allocation11 + $0x90] sm:$0xf]  ;;  %v1932_v3 = vor.u32 %v2083_v1, %v1931_v0  ;;  %v2082_v4 = vld [vmem:[#allocation11 + $0x98] sm:$0xf0]  ;;  %v1923_v6 = vld [vmem:[#allocation11 + $0x78] sm:$0xf] }
  0x33   : > { %v1928_v5 = vor.u32 %v2082_v4, %v1927_v2  ;;  %v2081_v7 = vld [vmem:[#allocation11 + $0x80] sm:$0xf0]  ;;  %v1919_v9 = vld [vmem:[#allocation11 + $0x60] sm:$0xf]  ;;  %v2080_v10 = vld [vmem:[#allocation11 + $0x68] sm:$0xf0] }
  0x34   : > { %2164 = vmatpush.bf16.msra.mxu1 %v1932_v3  ;;  %442 = vmatpush.bf16.msra.mxu0 %v1932_v3  ;;  %v1924_v8 = vor.u32 %v2081_v7, %v1923_v6  ;;  %v1920_v11 = vor.u32 %v2080_v10, %v1919_v9  ;;  %v1915_v12 = vld [vmem:[#allocation11 + $0x48] sm:$0xf]  ;;  %v2079_v13 = vld [vmem:[#allocation11 + $0x50] sm:$0xf0]  ;;  %v1911_v15 = vld [vmem:[#allocation11 + $0x30] sm:$0xf] }
  0x35   : > { %2165 = vmatpush.bf16.msra.mxu2 %v1932_v3  ;;  %v1916_v14 = vor.u32 %v2079_v13, %v1915_v12  ;;  %v2078_v16 = vld [vmem:[#allocation11 + $0x38] sm:$0xf0]  ;;  %v1907_v18 = vld [vmem:[#allocation11 + $0x18] sm:$0xf]  ;;  %v2077_v19 = vld [vmem:[#allocation11 + $0x20] sm:$0xf0] }
  0x36   : > { %v1912_v17 = vor.u32 %v2078_v16, %v1911_v15  ;;  %v1908_v20 = vor.u32 %v2077_v19, %v1907_v18  ;;  %v1903_v21 = vld [vmem:[#allocation11] sm:$0xf]  ;;  %v2076_v22 = vld [vmem:[#allocation11 + $0x8] sm:$0xf0]  ;;  %v2107_v24 = vld [vmem:[#allocation11 + $0xb4] sm:$0xf0] }
  0x37   : > { %v2023_v23 = vld [vmem:[#allocation11 + $0xac] sm:$0xf]  ;;  %v1904_v25 = vor.u32 %v2076_v22, %v1903_v21  ;;  %v2015_v27 = vld [vmem:[#allocation11 + $0x94] sm:$0xf]  ;;  %v2105_v28 = vld [vmem:[#allocation11 + $0x9c] sm:$0xf0] }
  0x38   : > { %2166 = vmatpush.bf16.msra.mxu1 %v1928_v5  ;;  %443 = vmatpush.bf16.msra.mxu0 %v1928_v5  ;;  %v2024_v26 = vor.u32 %v2107_v24, %v2023_v23  ;;  %v2071_v29 = vld [vmem:[%s2688_s22 + $0x18] sm:$0xff]  ;;  %v2016_v30 = vor.u32 %v2105_v28, %v2015_v27  ;;  %v2103_v32 = vld [vmem:[#allocation11 + $0x84] sm:$0xf0]  ;;  %v1999_v34 = vld [vmem:[#allocation11 + $0x64] sm:$0xf]  ;;  %vm539_vm0 = vcmask 7168  }
  0x39   : > { %2167 = vmatpush.bf16.msra.mxu2 %v1928_v5  ;;  %v2007_v31 = vld [vmem:[#allocation11 + $0x7c] sm:$0xf]  ;;  %v2101_v35 = vld [vmem:[#allocation11 + $0x6c] sm:$0xf0]  ;;  %v1991_v37 = vld [vmem:[#allocation11 + $0x4c] sm:$0xf] }
  0x3a   : > { %v2008_v33 = vor.u32 %v2103_v32, %v2007_v31  ;;  %v2000_v36 = vor.u32 %v2101_v35, %v1999_v34  ;;  %v2099_v38 = vld [vmem:[#allocation11 + $0x54] sm:$0xf0]  ;;  %v1983_v40 = vld [vmem:[#allocation11 + $0x34] sm:$0xf]  ;;  %v2097_v41 = vld [vmem:[#allocation11 + $0x3c] sm:$0xf0] }
  0x3b   : > { %v1992_v39 = vor.u32 %v2099_v38, %v1991_v37  ;;  %v2072_v42 = vld [vmem:[%s2688_s22 + $0x20] sm:$0xff]  ;;  %v1984_v43 = vor.u32 %v2097_v41, %v1983_v40  ;;  %v1975_v44 = vld [vmem:[#allocation11 + $0x1c] sm:$0xf]  ;;  %v2095_v45 = vld [vmem:[#allocation11 + $0x24] sm:$0xf0]  ;;  %s1868_s14 = sshll.u32 %s2684_s9, 7 }
  0x3c   : > { %2168 = vmatpush.bf16.msra.mxu1 %v1924_v8  ;;  %444 = vmatpush.bf16.msra.mxu0 %v1924_v8  ;;  %v1976_v46 = vor.u32 %v2095_v45, %v1975_v44  ;;  %v1967_v47 = vld [vmem:[#allocation11 + $0x4] sm:$0xf]  ;;  %v2093_v48 = vld [vmem:[#allocation11 + $0xc] sm:$0xf0]  ;;  %v2712_v51 = vld [vmem:[%s2695_s19 + $0x8] sm:$0xff]  ;;  %s3144_s27 = scalar_lea.vmem [#allocation12], %s1868_s14 }
  0x3d   : > { %2169 = vmatpush.bf16.msra.mxu2 %v1924_v8  ;;  %v1968_v49 = vor.u32 %v2093_v48, %v1967_v47  ;;  %v2708_v50 = vld [vmem:[%s2695_s19] sm:$0xff]  ;;  %v2716_v52 = vld [vmem:[%s2695_s19 + $0x10] sm:$0xff]  ;;  %v2720_v53 = vld [vmem:[%s2695_s19 + $0x18] sm:$0xff]  ;;  %s2116_s30 = sshll.u32 %s2540_s18, 7  ;;  %s1725_s8 = sshll.u32 %s3144_s27, 4  ;;  %s1726_s8 = int_to_ptr.vmem [resolvable:$true] %s1725_s8 }
  0x3e   : > { %v2724_v54 = vld [vmem:[%s2695_s19 + $0x20] sm:$0xff]  ;;  %v2728_v55 = vld [vmem:[%s2695_s19 + $0x28] sm:$0xff]  ;;  %v2732_v56 = vld [vmem:[%s2695_s19 + $0x30] sm:$0xff]  ;;  %s1724_s11 = scalar_lea.hbm %s3220_s4, %s2116_s30  ;;  %s1711_s18 = scalar_lea.sflag [#allocation8], %s2684_s9 }
  0x3f   : > { %v2737_v58 = vld [vmem:[%s3219_s3] ss:$0 sm:$0xff]  ;;  %v2743_v1 = vld [vmem:[%s2695_s19 + $0x38] sm:$0xff]  ;;  %v2069_v13 = vld [vmem:[%s2688_s22 + $0x8] sm:$0xff]  ;;  %s1727_s25 = sshll.u32 %s1724_s11, 4  ;;  %s1728_s25 = int_to_ptr.hbm [resolvable:$true] %s1727_s25 }
  0x40   : > { %2170 = vmatpush.bf16.msra.mxu1 %v1920_v11  ;;  %445 = vmatpush.bf16.msra.mxu0 %v1920_v11  ;;  %v2068_v6 = vld [vmem:[%s2688_s22] sm:$0xff]  ;;  %v2075_v32 = vld [vmem:[%s2688_s22 + $0x38] sm:$0xff]  ;;  %s2472_s26 = sshra.s32 %s1728_s25, 4  ;;  %s2473_s26 = int_to_ptr.hbm [resolvable:$true] %s2472_s26 }
  0x41   : > { %2171 = vmatpush.bf16.msra.mxu2 %v1920_v11  ;;  %s2474_s29 = scalar_lea.hbm %s2473_s26, 128  ;;  %p2479_p10 = scmp.lt.s32.totalorder %s2473_s26, %s3220_s4 }
  0x42   : > { %p2475_p1 = scmp.ne.s32.totalorder %s2473_s26, %s2474_s29 }
  0x44   : > { %2172 = vmatpush.bf16.msra.mxu1 %v1916_v14  ;;  %446 = vmatpush.bf16.msra.mxu0 %v1916_v14  ;;  %p2476_p4 = pnand %p2475_p1, %p2660_p5 }
  0x45   : > { %2173 = vmatpush.bf16.msra.mxu2 %v1916_v14 }
  0x46   : > { %p2477_p8 = pneg %p2476_p4 }
  0x48   : > { %2174 = vmatpush.bf16.msra.mxu1 %v1912_v17  ;;  %447 = vmatpush.bf16.msra.mxu0 %v1912_v17 }
  0x49   : > { %2175 = vmatpush.bf16.msra.mxu2 %v1912_v17  ;;  %v2070_v17 = vld [vmem:[%s2688_s22 + $0x10] sm:$0xff] }
  0x4c   : > { %2176 = vmatpush.bf16.msra.mxu1 %v1908_v20  ;;  %448 = vmatpush.bf16.msra.mxu0 %v1908_v20 }
  0x4d   : > { %2177 = vmatpush.bf16.msra.mxu2 %v1908_v20 }
  0x50   : > { %2178 = vmatpush.bf16.msra.mxu1 %v1904_v25  ;;  %449 = vmatpush.bf16.msra.mxu0 %v1904_v25 }
  0x51   : > { %2179 = vmatpush.bf16.msra.mxu2 %v1904_v25  ;;  %v2073_v25 = vld [vmem:[%s2688_s22 + $0x28] sm:$0xff] }
  0x53   : > { %465 = vmatmul.bf16.vlgmr.msra.gmra.mxu1 %v2071_v29  ;;  %450 = vmatmul.bf16.vlgmr.msra.gmra.mxu0 %v2068_v6  ;;  %v2074_v29 = vld [vmem:[%s2688_s22 + $0x30] sm:$0xff]  ;;  %s2478_s22 = scalar_lea.hbm %s3220_s4, 256 }
  0x54   : > { %748 = vmatpush.bf16.msrb.mxu1 %v2024_v26  ;;  %475 = vmatmul.bf16.vlgmr.msra.gmra.mxu2 %v2073_v25  ;;  %p2480_p12 = scmp.lt.s32.totalorder %s2478_s22, %s2474_s29 }
  0x56   : > { %p2481_p13 = por %p2480_p12, %p2479_p10 }
  0x58   : > { %749 = vmatpush.bf16.msrb.mxu1 %v2016_v30  ;;  %p2482_p0 = pnand %p2481_p13, %p2477_p8 }
  0x5c   : > { %750 = vmatpush.bf16.msrb.mxu1 %v2008_v33 }
  0x60   : > { %751 = vmatpush.bf16.msrb.mxu1 %v2000_v36 }
  0x63   : > { %470 = vmatmul.bf16.gmra.mxu1 %v2072_v42  ;;  %455 = vmatmul.bf16.gmra.mxu0 %v2069_v13  ;;  %v2102_v13 = vld [vmem:[#allocation11 + $0x80] sm:$0xf] }
  0x64   : > { %752 = vmatpush.bf16.msrb.mxu1 %v1992_v39  ;;  %480 = vmatmul.bf16.gmra.mxu2 %v2074_v29 }
  0x68   : > { %753 = vmatpush.bf16.msrb.mxu1 %v1984_v43 }
  0x6c   : > { %754 = vmatpush.bf16.msrb.mxu1 %v1976_v46 }
  0x70   : > { %755 = vmatpush.bf16.msrb.mxu1 %v1968_v49 }
  0x73   : > { %756 = vmatmul.bf16.vlgmr.msrb.gmra.mxu1 %v2708_v50  ;;  %460 = vmatmul.bf16.gmra.mxu0 %v2070_v17 }
  0x74   : > { %485 = vmatmul.bf16.gmra.mxu2 %v2075_v32 }
  0x83   : > { %761 = vmatmul.bf16.gmra.mxu1 %v2712_v51 }
  0x93   : > { %766 = vmatmul.bf16.gmra.mxu1 %v2716_v52 }
  0xa3   : > { %771 = vmatmul.bf16.gmra.mxu1 %v2720_v53 }
  0xb3   : > { %776 = vmatmul.bf16.gmra.mxu1 %v2724_v54 }
  0xc3   : > { %781 = vmatmul.bf16.gmra.mxu1 %v2728_v55 }
  0xd0   : > { %v466_v57 = vpop.f32.mrf.mxu1  ;;  %v451_v36 = vpop.f32.mrf.mxu0 }
  0xd1   : > { %v467_v59 = vadd.f32 %v2737_v58, %v466_v57  ;;  %v452_v38 = vadd.f32 %v2737_v58, %v451_v36 }
  0xd3   : > { %786 = vmatmul.bf16.gmra.mxu1 %v2732_v56  ;;  %v497_v62 = vmul.f32 0.17677669, %v467_v59  ;;  %v491_v41 = vmul.f32 0.17677669, %v452_v38 }
  0xd8   : > { %v468_v60 = vpop.f32.mrf.mxu1  ;;  %v453_v39 = vpop.f32.mrf.mxu0 }
  0xd9   : > { %v469_v61 = vadd.f32 %v2737_v58, %v468_v60  ;;  %v454_v42 = vadd.f32 %v2737_v58, %v453_v39 }
  0xdb   : > { %v498_v63 = vmul.f32 0.17677669, %v469_v61  ;;  %v492_v43 = vmul.f32 0.17677669, %v454_v42 }
  0xdd   : > { %v2135_v0 = vpack.c.bf16 %v498_v63, %v497_v62  ;;  %v2120_v44 = vpack.c.bf16 %v492_v43, %v491_v41  ;;  %v2106_v62 = vld [vmem:[#allocation11 + $0xb0] sm:$0xf]  ;;  %v2025_v63 = vld [vmem:[#allocation11 + $0xb8] sm:$0xf0] }
  0xdf   : > { %2159 = vst [vmem:[#allocation2 + $0x10] sm:$0xff] %v2135_v0   ;;  %v2028_v0 = vor.u32 %v2106_v62, %v2025_v63 }
  0xe0   : > { %v471_v2 = vpop.f32.mrf.mxu1  ;;  %2121 = vst [vmem:[#allocation2 + $0x30] sm:$0xff] %v2120_v44   ;;  %v456_v45 = vpop.f32.mrf.mxu0 }
  0xe1   : > { %v472_v3 = vadd.f32 %v2737_v58, %v471_v2  ;;  %v457_v47 = vadd.f32 %v2737_v58, %v456_v45  ;;  %797 = vmatpush.bf16.msrb.mxu2 %v2028_v0 }
  0xe3   : > { %791 = vmatmul.bf16.gmra.mxu1 %v2743_v1  ;;  %v499_v7 = vmul.f32 0.17677669, %v472_v3  ;;  %v493_v49 = vmul.f32 0.17677669, %v457_v47 }
  0xe6   : > { %v2111_v45 = vld [vmem:[#allocation2 + $0x10] sm:$0xff] }
  0xe8   : > { %v473_v4 = vpop.f32.mrf.mxu1  ;;  %v458_v48 = vpop.f32.mrf.mxu0 }
  0xe9   : > { %v474_v5 = vadd.f32 %v2737_v58, %v473_v4  ;;  %v459_v57 = vadd.f32 %v2737_v58, %v458_v48 }
  0xeb   : > { %v500_v8 = vmul.f32 0.17677669, %v474_v5  ;;  %v494_v59 = vmul.f32 0.17677669, %v459_v57 }
  0xed   : > { %v2140_v9 = vpack.c.bf16 %v500_v8, %v499_v7  ;;  %v2125_v60 = vpack.c.bf16 %v494_v59, %v493_v49  ;;  %v2104_v8 = vld [vmem:[#allocation11 + $0x98] sm:$0xf] }
  0xef   : > { %2160 = vst [vmem:[#allocation2 + $0x8] sm:$0xff] %v2140_v9   ;;  %v2017_v9 = vld [vmem:[#allocation11 + $0xa0] sm:$0xf0] }
  0xf0   : > { %v2749_v10 = vpop.f32.mrf.mxu1  ;;  %2157 = vst [vmem:[#allocation2] sm:$0xff] %v2125_v60   ;;  %v461_v61 = vpop.f32.mrf.mxu0  ;;  %v2020_v17 = vor.u32 %v2104_v8, %v2017_v9 }
  0xf1   : > { %v462_v2 = vadd.f32 %v2737_v58, %v461_v61 }
  0xf2   : > { %798 = vmatpush.bf16.msrb.mxu2 %v2020_v17 }
  0xf3   : > { %v495_v4 = vmul.f32 0.17677669, %v462_v2 }
  0xf6   : > { %v2112_v60 = vld [vmem:[#allocation2 + $0x8] sm:$0xff] }
  0xf8   : > { %v2751_v11 = vpop.f32.mrf.mxu1  ;;  %v463_v3 = vpop.f32.mrf.mxu0 }
  0xf9   : > { %v846_v12 = vpack.c.bf16 %v2751_v11, %v2749_v10  ;;  %v464_v5 = vadd.f32 %v2737_v58, %v463_v3  ;;  %v2109_v10 = vld [vmem:[#allocation2] sm:$0xff] }
  0xfb   : > { %v496_v6 = vmul.f32 0.17677669, %v464_v5 }
  0xfd   : > { %v2130_v7 = vpack.c.bf16 %v496_v6, %v495_v4 }
  0xff   : > { %2158 = vst [vmem:[#allocation2 + $0x18] sm:$0xff] %v2130_v7  }
 0x100   : > { %v2756_v14 = vpop.f32.mrf.mxu1 }
 0x106   : > { %v2110_v39 = vld [vmem:[#allocation2 + $0x18] sm:$0xff] }
 0x108   : > { %v2758_v15 = vpop.f32.mrf.mxu1 }
 0x109   : > { %v847_v16 = vpack.c.bf16 %v2758_v15, %v2756_v14  ;;  %v2096_v14 = vld [vmem:[#allocation11 + $0x38] sm:$0xf]  ;;  %v1985_v15 = vld [vmem:[#allocation11 + $0x40] sm:$0xf0] }
 0x110   : > { %v767_v18 = vpop.f32.mrf.mxu1 }
 0x118   : > { %v769_v19 = vpop.f32.mrf.mxu1 }
 0x119   : > { %v848_v20 = vpack.c.bf16 %v769_v19, %v767_v18  ;;  %v2009_v18 = vld [vmem:[#allocation11 + $0x88] sm:$0xf0] }
 0x11a   : > { %v2012_v19 = vor.u32 %v2102_v13, %v2009_v18  ;;  %v2555_v18 = vmov -inf  }
 0x11b   : > { %540 = vst.msk [vmem:[#allocation3] sm:$0xff] %vm539_vm0, %v2555_v18 }
 0x11c   : > { %799 = vmatpush.bf16.msrb.mxu2 %v2012_v19  ;;  %541 = vst.msk [vmem:[#allocation3 + $0x8] sm:$0xff] %vm539_vm0, %v2555_v18 }
 0x11d   : > { %542 = vst.msk [vmem:[#allocation3 + $0x10] sm:$0xff] %vm539_vm0, %v2555_v18 }
 0x11e   : > { %543 = vst.msk [vmem:[#allocation3 + $0x18] sm:$0xff] %vm539_vm0, %v2555_v18 }
 0x11f   : > { %544 = vst.msk [vmem:[#allocation3 + $0x20] sm:$0xff] %vm539_vm0, %v2555_v18 }
 0x120   : > { %v772_v21 = vpop.f32.mrf.mxu1  ;;  %545 = vst.msk [vmem:[#allocation3 + $0x28] sm:$0xff] %vm539_vm0, %v2555_v18 }
 0x121   : > { %546 = vst.msk [vmem:[#allocation3 + $0x30] sm:$0xff] %vm539_vm0, %v2555_v18 }
 0x122   : > { %547 = vst.msk [vmem:[#allocation3 + $0x38] sm:$0xff] %vm539_vm0, %v2555_v18 }
 0x123   : > { %548 = vst.msk [vmem:[#allocation3 + $0x40] sm:$0xff] %vm539_vm0, %v2555_v18 }
 0x124   : > { %549 = vst.msk [vmem:[#allocation3 + $0x48] sm:$0xff] %vm539_vm0, %v2555_v18 }
 0x125   : > { %550 = vst.msk [vmem:[#allocation3 + $0x50] sm:$0xff] %vm539_vm0, %v2555_v18 }
 0x126   : > { %551 = vst.msk [vmem:[#allocation3 + $0x58] sm:$0xff] %vm539_vm0, %v2555_v18 }
 0x127   : > { %552 = vst.msk [vmem:[#allocation3 + $0x60] sm:$0xff] %vm539_vm0, %v2555_v18 }
 0x128   : > { %v774_v22 = vpop.f32.mrf.mxu1  ;;  %553 = vst.msk [vmem:[#allocation3 + $0x68] sm:$0xff] %vm539_vm0, %v2555_v18 }
 0x129   : > { %v849_v23 = vpack.c.bf16 %v774_v22, %v772_v21  ;;  %v2100_v21 = vld [vmem:[#allocation11 + $0x68] sm:$0xf]  ;;  %v2001_v22 = vld [vmem:[#allocation11 + $0x70] sm:$0xf0]  ;;  %554 = vst.msk [vmem:[#allocation3 + $0x70] sm:$0xff] %vm539_vm0, %v2555_v18 }
 0x12a   : > { %555 = vst.msk [vmem:[#allocation3 + $0x78] sm:$0xff] %vm539_vm0, %v2555_v18 }
 0x130   : > { %v777_v24 = vpop.f32.mrf.mxu1 }
 0x138   : > { %v779_v26 = vpop.f32.mrf.mxu1 }
 0x139   : > { %v850_v27 = vpack.c.bf16 %v779_v26, %v777_v24  ;;  %v2098_v24 = vld [vmem:[#allocation11 + $0x50] sm:$0xf] }
 0x13a   : > { %v2108_v26 = vld [vmem:[#allocation2 + $0x30] sm:$0xff] }
 0x140   : > { %v782_v28 = vpop.f32.mrf.mxu1 }
 0x148   : > { %v784_v30 = vpop.f32.mrf.mxu1 }
 0x149   : > { %v851_v46 = vpack.c.bf16 %v784_v30, %v782_v28  ;;  %v1977_v28 = vld [vmem:[#allocation11 + $0x28] sm:$0xf0]  ;;  %v2092_v30 = vld [vmem:[#allocation11 + $0x8] sm:$0xf] }
 0x150   : > { %v787_v31 = vpop.f32.mrf.mxu1 }
 0x158   : > { %v789_v33 = vpop.f32.mrf.mxu1 }
 0x159   : > { %v852_v40 = vpack.c.bf16 %v789_v33, %v787_v31  ;;  %v1969_v31 = vld [vmem:[#allocation11 + $0x10] sm:$0xf0]  ;;  %v476_v33 = vpop.f32.mrf.mxu2 }
 0x15a   : > { %v1972_v32 = vor.u32 %v2092_v30, %v1969_v31  ;;  %v477_v11 = vadd.f32 %v2737_v58, %v476_v33 }
 0x160   : > { %v792_v34 = vpop.f32.mrf.mxu1 }
 0x168   : > { %v794_v35 = vpop.f32.mrf.mxu1 }
 0x169   : > { %v853_v37 = vpack.c.bf16 %v794_v35, %v792_v34  ;;  %v501_v34 = vmul.f32 0.17677669, %v477_v11 }
 0x16b   : > { %944 = vmatpush.bf16.xpose.msra.mxu3 %v853_v37 }
 0x173   : > { %945 = vmatpush.bf16.xpose.msra.mxu3 %v852_v40 }
 0x17b   : > { %946 = vmatpush.bf16.xpose.msra.mxu3 %v851_v46 }
 0x183   : > { %947 = vmatpush.bf16.xpose.msra.mxu3 %v850_v27  ;;  %v1988_v27 = vor.u32 %v2096_v14, %v1985_v15 }
 0x18b   : > { %948 = vmatpush.bf16.xpose.msra.mxu3 %v849_v23  ;;  %v2004_v23 = vor.u32 %v2100_v21, %v2001_v22 }
 0x18d   : > { %800 = vmatpush.bf16.msrb.mxu2 %v2004_v23 }
 0x193   : > { %949 = vmatpush.bf16.xpose.msra.mxu3 %v848_v20  ;;  %v1993_v20 = vld [vmem:[#allocation11 + $0x58] sm:$0xf0] }
 0x194   : > { %v1996_v25 = vor.u32 %v2098_v24, %v1993_v20  ;;  %v2556_v24 = vmov 0.0  }
 0x195   : > { %556 = vst.msk [vmem:[#allocation4] sm:$0xff] %vm539_vm0, %v2556_v24 }
 0x196   : > { %801 = vmatpush.bf16.msrb.mxu2 %v1996_v25  ;;  %557 = vst.msk [vmem:[#allocation4 + $0x8] sm:$0xff] %vm539_vm0, %v2556_v24 }
 0x197   : > { %558 = vst.msk [vmem:[#allocation4 + $0x10] sm:$0xff] %vm539_vm0, %v2556_v24 }
 0x198   : > { %559 = vst.msk [vmem:[#allocation4 + $0x18] sm:$0xff] %vm539_vm0, %v2556_v24 }
 0x199   : > { %560 = vst.msk [vmem:[#allocation4 + $0x20] sm:$0xff] %vm539_vm0, %v2556_v24 }
 0x19a   : > { %802 = vmatpush.bf16.msrb.mxu2 %v1988_v27  ;;  %561 = vst.msk [vmem:[#allocation4 + $0x28] sm:$0xff] %vm539_vm0, %v2556_v24 }
 0x19b   : > { %950 = vmatpush.bf16.xpose.msra.mxu3 %v847_v16  ;;  %v2094_v16 = vld [vmem:[#allocation11 + $0x20] sm:$0xf]  ;;  %562 = vst.msk [vmem:[#allocation4 + $0x30] sm:$0xff] %vm539_vm0, %v2556_v24 }
 0x19c   : > { %v1980_v29 = vor.u32 %v2094_v16, %v1977_v28  ;;  %563 = vst.msk [vmem:[#allocation4 + $0x38] sm:$0xff] %vm539_vm0, %v2556_v24  ;;  %v2889_v28 = vld [vmem:[#allocation3] sm:$0xff] }
 0x19d   : > { %564 = vst.msk [vmem:[#allocation4 + $0x40] sm:$0xff] %vm539_vm0, %v2556_v24 }
 0x19e   : > { %803 = vmatpush.bf16.msrb.mxu2 %v1980_v29  ;;  %565 = vst.msk [vmem:[#allocation4 + $0x48] sm:$0xff] %vm539_vm0, %v2556_v24 }
 0x19f   : > { %566 = vst.msk [vmem:[#allocation4 + $0x50] sm:$0xff] %vm539_vm0, %v2556_v24 }
 0x1a0   : > { %567 = vst.msk [vmem:[#allocation4 + $0x58] sm:$0xff] %vm539_vm0, %v2556_v24 }
 0x1a1   : > { %568 = vst.msk [vmem:[#allocation4 + $0x60] sm:$0xff] %vm539_vm0, %v2556_v24 }
 0x1a2   : > { %804 = vmatpush.bf16.msrb.mxu2 %v1972_v32  ;;  %569 = vst.msk [vmem:[#allocation4 + $0x68] sm:$0xff] %vm539_vm0, %v2556_v24 }
 0x1a3   : > { %951 = vmatpush.bf16.xpose.msra.mxu3 %v846_v12  ;;  %v478_v12 = vpop.f32.mrf.mxu2  ;;  %570 = vst.msk [vmem:[#allocation4 + $0x70] sm:$0xff] %vm539_vm0, %v2556_v24 }
 0x1a4   : > { %v479_v35 = vadd.f32 %v2737_v58, %v478_v12  ;;  %571 = vst.msk [vmem:[#allocation4 + $0x78] sm:$0xff] %vm539_vm0, %v2556_v24 }
 0x1a5   : > { %805 = vmatmul.bf16.vlgmr.msrb.gmra.mxu2 %v2708_v50 }
 0x1a6   : > { %v502_v36 = vmul.f32 0.17677669, %v479_v35 }
 0x1a8   : > { %v2145_v37 = vpack.c.bf16 %v502_v36, %v501_v34  ;;  %v2911_v36 = vld [vmem:[#allocation3 + $0x10] sm:$0xff] }
 0x1aa   : > { %952 = vmatmul.bf16.vlgmr.msra.gmra.mxu3 %v2108_v26  ;;  %2161 = vst [vmem:[#allocation2 + $0x20] sm:$0xff] %v2145_v37   ;;  %v2557_v26 = vmov 0   ;;  %v2271_v37 = vld [vmem:[%s3219_s3 + $0x1] ss:$0 sm:$0xff] }
 0x1ab   : > { %v481_v38 = vpop.f32.mrf.mxu2  ;;  %2267 = vset.pattern.permute.xlu1 %v2557_v26  ;;  %2268 = vset.pattern.permute.xlu2 %v2557_v26 }
 0x1ac   : > { %v482_v40 = vadd.f32 %v2737_v58, %v481_v38  ;;  %2269 = vset.pattern.permute.xlu0 %v2557_v26 }
 0x1ae   : > { %v503_v42 = vmul.f32 0.17677669, %v482_v40 }
 0x1b1   : > { %v2113_v61 = vld [vmem:[#allocation2 + $0x20] sm:$0xff] }
 0x1b3   : > { %v483_v41 = vpop.f32.mrf.mxu2 }
 0x1b4   : > { %v484_v50 = vadd.f32 %v2737_v58, %v483_v41 }
 0x1b5   : > { %810 = vmatmul.bf16.gmra.mxu2 %v2712_v51 }
 0x1b6   : > { %v504_v43 = vmul.f32 0.17677669, %v484_v50  ;;  %v2922_v50 = vld [vmem:[#allocation3 + $0x18] sm:$0xff] }
 0x1b8   : > { %v2150_v44 = vpack.c.bf16 %v504_v43, %v503_v42 }
 0x1ba   : > { %957 = vmatmul.bf16.gmra.mxu3 %v2109_v10  ;;  %2162 = vst [vmem:[#allocation2 + $0x28] sm:$0xff] %v2150_v44   ;;  %v2901_v10 = vld [vmem:[#allocation3 + $0x8] sm:$0xff] }
 0x1bb   : > { %v486_v46 = vpop.f32.mrf.mxu2 }
 0x1bc   : > { %v487_v47 = vadd.f32 %v2737_v58, %v486_v46 }
 0x1be   : > { %v505_v49 = vmul.f32 0.17677669, %v487_v47 }
 0x1c3   : > { %v488_v48 = vpop.f32.mrf.mxu2 }
 0x1c4   : > { %v489_v51 = vadd.f32 %v2737_v58, %v488_v48 }
 0x1c5   : > { %815 = vmatmul.bf16.gmra.mxu2 %v2716_v52  ;;  %v2114_v52 = vld [vmem:[#allocation2 + $0x28] sm:$0xff] }
 0x1c6   : > { %v506_v57 = vmul.f32 0.17677669, %v489_v51 }
 0x1c8   : > { %v2155_v59 = vpack.c.bf16 %v506_v57, %v505_v49  ;;  %v997_v57 = vld [vmem:[#allocation3 + $0x20] sm:$0xff] }
 0x1ca   : > { %962 = vmatmul.bf16.gmra.mxu3 %v2110_v39  ;;  %2163 = vst [vmem:[#allocation2 + $0x38] sm:$0xff] %v2155_v59  }
 0x1d1   : > { %v2115_v62 = vld [vmem:[#allocation2 + $0x38] sm:$0xff] }
 0x1d5   : > { %820 = vmatmul.bf16.gmra.mxu2 %v2720_v53 }
 0x1da   : > { %967 = vmatmul.bf16.gmra.mxu3 %v2111_v45 }
 0x1e5   : > { %825 = vmatmul.bf16.gmra.mxu2 %v2724_v54 }
 0x1ea   : > { %972 = vmatmul.bf16.gmra.mxu3 %v2112_v60 }
 0x1f5   : > { %830 = vmatmul.bf16.gmra.mxu2 %v2728_v55 }
 0x1fa   : > { %977 = vmatmul.bf16.gmra.mxu3 %v2113_v61 }
 0x205   : > { %835 = vmatmul.bf16.gmra.mxu2 %v2732_v56 }
 0x20a   : > { %982 = vmatmul.bf16.gmra.mxu3 %v2114_v52 }
 0x215   : > { %840 = vmatmul.bf16.gmra.mxu2 %v2743_v1 }
 0x21a   : > { %987 = vmatmul.bf16.gmra.mxu3 %v2115_v62 }
 0x228   : > { %v2798_v54 = vpop.f32.mrf.mxu2 }
 0x22d   : > { %v2792_v58 = vpop.f32.mrf.mxu3 }
 0x22e   : > { %1009 = vmax.xlane.f32.xlu0 %v2792_v58 }
 0x230   : > { %v2803_v55 = vpop.f32.mrf.mxu2 }
 0x235   : > { %v2795_v53 = vpop.f32.mrf.mxu3 }
 0x236   : > { %1011 = vmax.xlane.f32.xlu0 %v2795_v53 }
 0x238   : > { %v2808_v1 = vpop.f32.mrf.mxu2 }
 0x23d   : > { %v2800_v63 = vpop.f32.mrf.mxu3 }
 0x23e   : > { %1013 = vmax.xlane.f32.xlu1 %v2800_v63 }
 0x240   : > { %v2813_v2 = vpop.f32.mrf.mxu2 }
 0x245   : > { %v2805_v56 = vpop.f32.mrf.mxu3 }
 0x246   : > { %1015 = vmax.xlane.f32.xlu1 %v2805_v56 }
 0x248   : > { %v2818_v4 = vpop.f32.mrf.mxu2 }
 0x24d   : > { %v2810_v0 = vpop.f32.mrf.mxu3 }
 0x24e   : > { %1017 = vmax.xlane.f32.xlu2 %v2810_v0 }
 0x250   : > { %v2823_v6 = vpop.f32.mrf.mxu2 }
 0x255   : > { %v2815_v3 = vpop.f32.mrf.mxu3 }
 0x256   : > { %1019 = vmax.xlane.f32.xlu2 %v2815_v3 }
 0x258   : > { %v2828_v8 = vpop.f32.mrf.mxu2 }
 0x259   : > { %v862_v62 = vadd.f32 %v2271_v37, %v2828_v8  ;;  %v858_v8 = vadd.f32 %v2271_v37, %v2808_v1  ;;  %v856_v1 = vadd.f32 %v2271_v37, %v2798_v54 }
 0x25d   : > { %v2820_v5 = vpop.f32.mrf.mxu3 }
 0x25e   : > { %1021 = vmax.xlane.f32.xlu0 %v2820_v5 }
 0x260   : > { %v2833_v13 = vpop.f32.mrf.mxu2 }
 0x261   : > { %v863_v18 = vadd.f32 %v2271_v37, %v2833_v13  ;;  %v859_v13 = vadd.f32 %v2271_v37, %v2813_v2  ;;  %v857_v2 = vadd.f32 %v2271_v37, %v2803_v55 }
 0x265   : > { %v2825_v7 = vpop.f32.mrf.mxu3 }
 0x266   : > { %1023 = vmax.xlane.f32.xlu1 %v2825_v7 }
 0x268   : > { %v2839_v19 = vpop.f32.mrf.mxu2 }
 0x269   : > { %v864_v24 = vadd.f32 %v2271_v37, %v2839_v19  ;;  %v860_v19 = vadd.f32 %v2271_v37, %v2818_v4  ;;  %v1000_v4 = vld [vmem:[#allocation3 + $0x38] sm:$0xff] }
 0x26d   : > { %v2830_v9 = vpop.f32.mrf.mxu3 }
 0x26e   : > { %1025 = vmax.xlane.f32.xlu2 %v2830_v9 }
 0x270   : > { %v2852_v22 = vpop.f32.mrf.mxu2 }
 0x271   : > { %v865_v26 = vadd.f32 %v2271_v37, %v2852_v22  ;;  %v861_v22 = vadd.f32 %v2271_v37, %v2823_v6  ;;  %v872_v6 = vpack.c.bf16 %v857_v2, %v856_v1 }
 0x275   : > { %v2835_v17 = vpop.f32.mrf.mxu3 }
 0x276   : > { %1027 = vmax.xlane.f32.xlu0 %v2835_v17 }
 0x278   : > { %v831_v20 = vpop.f32.mrf.mxu2 }
 0x279   : > { %v866_v49 = vadd.f32 %v2271_v37, %v831_v20  ;;  %v2938_v20 = vld [vmem:[#allocation3 + $0x28] sm:$0xff] }
 0x27d   : > { %v2843_v21 = vpop.f32.mrf.mxu3 }
 0x27e   : > { %1029 = vmax.xlane.f32.xlu1 %v2843_v21 }
 0x280   : > { %v833_v14 = vpop.f32.mrf.mxu2 }
 0x281   : > { %v867_v51 = vadd.f32 %v2271_v37, %v833_v14  ;;  %v876_v14 = vpack.c.bf16 %v865_v26, %v864_v24 }
 0x283   : > { %v877_v52 = vpack.c.bf16 %v867_v51, %v866_v49 }
 0x285   : > { %v2856_v23 = vpop.f32.mrf.mxu3 }
 0x286   : > { %1031 = vmax.xlane.f32.xlu2 %v2856_v23 }
 0x288   : > { %v836_v16 = vpop.f32.mrf.mxu2 }
 0x289   : > { %v868_v46 = vadd.f32 %v2271_v37, %v836_v16  ;;  %v875_v16 = vpack.c.bf16 %v863_v18, %v862_v62 }
 0x28d   : > { %v2867_v25 = vpop.f32.mrf.mxu3 }
 0x28e   : > { %1033 = vmax.xlane.f32.xlu0 %v2867_v25 }
 0x290   : > { %v838_v31 = vpop.f32.mrf.mxu2 }
 0x291   : > { %v869_v48 = vadd.f32 %v2271_v37, %v838_v31 }
 0x293   : > { %v878_v59 = vpack.c.bf16 %v869_v48, %v868_v46 }
 0x295   : > { %v2878_v15 = vpop.f32.mrf.mxu3 }
 0x296   : > { %1035 = vmax.xlane.f32.xlu1 %v2878_v15 }
 0x298   : > { %v841_v34 = vpop.f32.mrf.mxu2 }
 0x299   : > { %v870_v41 = vadd.f32 %v2271_v37, %v841_v34  ;;  %v874_v34 = vpack.c.bf16 %v861_v22, %v860_v19 }
 0x29d   : > { %v2886_v27 = vpop.f32.mrf.mxu3 }
 0x29e   : > { %1037 = vmax.xlane.f32.xlu2 %v2886_v27 }
 0x2a0   : > { %v843_v40 = vpop.f32.mrf.mxu2 }
 0x2a1   : > { %v1010_v29 = vpop.xlane.xlu0 %1009  ;;  %v871_v42 = vadd.f32 %v2271_v37, %v843_v40  ;;  %v2971_v37 = vld [vmem:[#allocation3 + $0x48] sm:$0xff] }
 0x2a2   : > { %v2892_v30 = vmax.f32 %v2889_v28, %v1010_v29 }
 0x2a3   : > { %v879_v43 = vpack.c.bf16 %v871_v42, %v870_v41 }
 0x2a4   : > { %v1057_v32 = vsub.f32 %v2889_v28, %v2892_v30  ;;  %1531 = vst.msk [vmem:[#allocation3] sm:$0xff] %vm539_vm0, %v2892_v30 }
 0x2a5   : > { %v2898_v33 = vpop.f32.mrf.mxu3  ;;  %1450 = vmatpush.bf16.msrb.mxu0 %v879_v43 }
 0x2a6   : > { %1039 = vmax.xlane.f32.xlu0 %v2898_v33 }
 0x2a9   : > { %v1012_v11 = vpop.xlane.xlu0 %1011  ;;  %1451 = vmatpush.bf16.msrb.mxu0 %v878_v59 }
 0x2aa   : > { %v2904_v12 = vmax.f32 %v2901_v10, %v1012_v11  ;;  %v2950_v11 = vld [vmem:[#allocation3 + $0x30] sm:$0xff] }
 0x2ac   : > { %v1058_v35 = vsub.f32 %v2901_v10, %v2904_v12  ;;  %1532 = vst.msk [vmem:[#allocation3 + $0x8] sm:$0xff] %vm539_vm0, %v2904_v12  ;;  %v1073_v10 = vmul.f32 1.442695, %v1057_v32 }
 0x2ad   : > { %1452 = vmatpush.bf16.msrb.mxu0 %v877_v52 }
 0x2af   : > { %1107 = vperm.xlu1 %2267, %v2892_v30  }
 0x2b1   : > { %v1014_v38 = vpop.xlane.xlu1 %1013  ;;  %1453 = vmatpush.bf16.msrb.mxu0 %v876_v14  ;;  %v1005_v14 = vld [vmem:[#allocation3 + $0x60] sm:$0xff] }
 0x2b2   : > { %v2917_v39 = vmax.f32 %v2911_v36, %v1014_v38  ;;  %v873_v38 = vpack.c.bf16 %v859_v13, %v858_v8 }
 0x2b4   : > { %1533 = vst.msk [vmem:[#allocation3 + $0x10] sm:$0xff] %vm539_vm0, %v2917_v39  ;;  %v1059_v55 = vsub.f32 %v2911_v36, %v2917_v39  ;;  %v1075_v36 = vmul.f32 1.442695, %v1058_v35 }
 0x2b5   : > { %1454 = vmatpush.bf16.msrb.mxu0 %v875_v16 }
 0x2b6   : > { %1112 = vperm.xlu2 %2268, %v2904_v12   ;;  %v1077_v48 = vmul.f32 1.442695, %v1059_v55 }
 0x2b8   : > { %2272 = vpow2.f32 %v1077_v48 }
 0x2b9   : > { %v1016_v44 = vpop.xlane.xlu1 %1015  ;;  %1455 = vmatpush.bf16.msrb.mxu0 %v874_v34  ;;  %2274 = vpow2.f32 %v1075_v36 }
 0x2ba   : > { %v2925_v45 = vmax.f32 %v2922_v50, %v1016_v44  ;;  %1117 = vperm.xlu0 %2269, %v2917_v39   ;;  %v2961_v44 = vld [vmem:[#allocation3 + $0x40] sm:$0xff] }
 0x2bc   : > { %v1060_v47 = vsub.f32 %v2922_v50, %v2925_v45  ;;  %1534 = vst.msk [vmem:[#allocation3 + $0x18] sm:$0xff] %vm539_vm0, %v2925_v45  ;;  %v1006_v50 = vld [vmem:[#allocation3 + $0x68] sm:$0xff] }
 0x2bd   : > { %1456 = vmatpush.bf16.msrb.mxu0 %v873_v38 }
 0x2be   : > { %1122 = vperm.xlu2 %2268, %v2925_v45   ;;  %v2987_v18 = vpop.eup %2272  ;;  %v1079_v28 = vmul.f32 1.442695, %v1060_v47 }
 0x2c1   : > { %v1018_v60 = vpop.xlane.xlu2 %1017  ;;  %1457 = vmatpush.bf16.msrb.mxu0 %v872_v6 }
 0x2c2   : > { %v1045_v61 = vmax.f32 %v997_v57, %v1018_v60  ;;  %v2979_v60 = vld [vmem:[#allocation3 + $0x50] sm:$0xff] }
 0x2c4   : > { %1535 = vst.msk [vmem:[#allocation3 + $0x20] sm:$0xff] %vm539_vm0, %v1045_v61  ;;  %1127 = vperm.xlu1 %2267, %v1045_v61   ;;  %v1061_v59 = vsub.f32 %v997_v57, %v1045_v61  ;;  %v1004_v57 = vld [vmem:[#allocation3 + $0x58] sm:$0xff]  ;;  %v2996_v61 = vpop.eup %2274 }
 0x2c6   : > { %v1081_v52 = vmul.f32 1.442695, %v1061_v59 }
 0x2c8   : > { %2276 = vpow2.f32 %v1081_v52 }
 0x2c9   : > { %v1020_v29 = vpop.xlane.xlu2 %1019  ;;  %2278 = vpow2.f32 %v1073_v10 }
 0x2ca   : > { %v2941_v31 = vmax.f32 %v2938_v20, %v1020_v29  ;;  %2280 = vpow2.f32 %v1079_v28 }
 0x2cc   : > { %1536 = vst.msk [vmem:[#allocation3 + $0x28] sm:$0xff] %vm539_vm0, %v2941_v31  ;;  %1132 = vperm.xlu2 %2268, %v2941_v31   ;;  %v1062_v8 = vsub.f32 %v2938_v20, %v2941_v31  ;;  %v1007_v31 = vld [vmem:[#allocation3 + $0x70] sm:$0xff] }
 0x2ce   : > { %v2998_v24 = vpop.eup %2276  ;;  %v1083_v45 = vmul.f32 1.442695, %v1062_v8 }
 0x2cf   : > { %v3006_v29 = vpop.eup %2278 }
 0x2d0   : > { %v3014_v34 = vpop.eup %2280 }
 0x2d1   : > { %v1022_v40 = vpop.xlane.xlu0 %1021 }
 0x2d2   : > { %v2953_v41 = vmax.f32 %v2950_v11, %v1022_v40 }
 0x2d4   : > { %1537 = vst.msk [vmem:[#allocation3 + $0x30] sm:$0xff] %vm539_vm0, %v2953_v41  ;;  %1137 = vperm.xlu1 %2267, %v2953_v41   ;;  %v1063_v13 = vsub.f32 %v2950_v11, %v2953_v41 }
 0x2d6   : > { %v1085_v47 = vmul.f32 1.442695, %v1063_v13 }
 0x2d9   : > { %v1024_v42 = vpop.xlane.xlu1 %1023 }
 0x2da   : > { %v1048_v43 = vmax.f32 %v1000_v4, %v1024_v42 }
 0x2dc   : > { %1538 = vst.msk [vmem:[#allocation3 + $0x38] sm:$0xff] %vm539_vm0, %v1048_v43  ;;  %1142 = vperm.xlu2 %2268, %v1048_v43   ;;  %v1064_v26 = vsub.f32 %v1000_v4, %v1048_v43  ;;  %v1008_v43 = vld [vmem:[#allocation3 + $0x78] sm:$0xff] }
 0x2de   : > { %v1087_v32 = vmul.f32 1.442695, %v1064_v26 }
 0x2e0   : > { %2282 = vpow2.f32 %v1087_v32 }
 0x2e1   : > { %v1026_v46 = vpop.xlane.xlu2 %1025  ;;  %2284 = vpow2.f32 %v1083_v45 }
 0x2e2   : > { %v2964_v54 = vmax.f32 %v2961_v44, %v1026_v46  ;;  %2286 = vpow2.f32 %v1085_v47 }
 0x2e4   : > { %1539 = vst.msk [vmem:[#allocation3 + $0x40] sm:$0xff] %vm539_vm0, %v2964_v54  ;;  %1147 = vperm.xlu1 %2267, %v2964_v54   ;;  %v1065_v20 = vsub.f32 %v2961_v44, %v2964_v54 }
 0x2e6   : > { %v3016_v38 = vpop.eup %2282  ;;  %v1089_v11 = vmul.f32 1.442695, %v1065_v20 }
 0x2e7   : > { %v3023_v41 = vpop.eup %2284 }
 0x2e8   : > { %v3025_v2 = vpop.eup %2286  ;;  %2288 = vpow2.f32 %v1089_v11 }
 0x2e9   : > { %v1028_v49 = vpop.xlane.xlu0 %1027 }
 0x2ea   : > { %v2974_v51 = vmax.f32 %v2971_v37, %v1028_v49 }
 0x2ec   : > { %1540 = vst.msk [vmem:[#allocation3 + $0x48] sm:$0xff] %vm539_vm0, %v2974_v51  ;;  %1152 = vperm.xlu0 %2269, %v2974_v51   ;;  %v1066_v4 = vsub.f32 %v2971_v37, %v2974_v51 }
 0x2ee   : > { %v1091_v44 = vmul.f32 1.442695, %v1066_v4  ;;  %v3034_v37 = vpop.eup %2288 }
 0x2f0   : > { %2290 = vpow2.f32 %v1091_v44 }
 0x2f1   : > { %v1030_v39 = vpop.xlane.xlu1 %1029 }
 0x2f2   : > { %v2985_v62 = vmax.f32 %v2979_v60, %v1030_v39 }
 0x2f4   : > { %1541 = vst.msk [vmem:[#allocation3 + $0x50] sm:$0xff] %vm539_vm0, %v2985_v62  ;;  %1157 = vperm.xlu2 %2268, %v2985_v62   ;;  %1358 = vperm.xlu0 %2269, %v2987_v18   ;;  %v1067_v42 = vsub.f32 %v2979_v60, %v2985_v62 }
 0x2f6   : > { %v1093_v55 = vmul.f32 1.442695, %v1067_v42 }
 0x2f9   : > { %v1032_v12 = vpop.xlane.xlu2 %1031 }
 0x2fa   : > { %v1052_v35 = vmax.f32 %v1004_v57, %v1032_v12  ;;  %v3039_v12 = vpop.eup %2290 }
 0x2fc   : > { %1542 = vst.msk [vmem:[#allocation3 + $0x58] sm:$0xff] %vm539_vm0, %v1052_v35  ;;  %1162 = vperm.xlu1 %2267, %v1052_v35   ;;  %1353 = vperm.xlu2 %2268, %v2996_v61   ;;  %v1068_v6 = vsub.f32 %v1004_v57, %v1052_v35 }
 0x2fd   : > { %1368 = vperm.xlu0 %2269, %v2998_v24  }
 0x2fe   : > { %v1095_v46 = vmul.f32 1.442695, %v1068_v6 }
 0x300   : > { %2292 = vpow2.f32 %v1095_v46 }
 0x301   : > { %v1034_v30 = vpop.xlane.xlu0 %1033  ;;  %2294 = vpow2.f32 %v1093_v55 }
 0x302   : > { %v1053_v16 = vmax.f32 %v1005_v14, %v1034_v30 }
 0x304   : > { %1543 = vst.msk [vmem:[#allocation3 + $0x60] sm:$0xff] %vm539_vm0, %v1053_v16  ;;  %1348 = vperm.xlu1 %2267, %v3006_v29   ;;  %v1069_v48 = vsub.f32 %v1005_v14, %v1053_v16 }
 0x305   : > { %1167 = vperm.xlu0 %2269, %v1053_v16  }
 0x306   : > { %v1097_v39 = vmul.f32 1.442695, %v1069_v48  ;;  %v3042_v26 = vpop.eup %2292 }
 0x307   : > { %v3044_v14 = vpop.eup %2294 }
 0x308   : > { %2296 = vpow2.f32 %v1097_v39 }
 0x309   : > { %v1036_v19 = vpop.xlane.xlu1 %1035 }
 0x30a   : > { %v1054_v22 = vmax.f32 %v1006_v50, %v1036_v19 }
 0x30c   : > { %1544 = vst.msk [vmem:[#allocation3 + $0x68] sm:$0xff] %vm539_vm0, %v1054_v22  ;;  %1363 = vperm.xlu1 %2267, %v3014_v34   ;;  %1172 = vperm.xlu2 %2268, %v1054_v22   ;;  %v1070_v51 = vsub.f32 %v1006_v50, %v1054_v22 }
 0x30d   : > { %1383 = vperm.xlu0 %2269, %v3016_v38  }
 0x30e   : > { %v1099_v52 = vmul.f32 1.442695, %v1070_v51  ;;  %v3049_v30 = vpop.eup %2296 }
 0x310   : > { %2298 = vpow2.f32 %v1099_v52 }
 0x311   : > { %v1038_v40 = vpop.xlane.xlu2 %1037 }
 0x312   : > { %v1055_v1 = vmax.f32 %v1007_v31, %v1038_v40 }
 0x314   : > { %1545 = vst.msk [vmem:[#allocation3 + $0x70] sm:$0xff] %vm539_vm0, %v1055_v1  ;;  %1378 = vperm.xlu1 %2267, %v3025_v2   ;;  %1373 = vperm.xlu2 %2268, %v3023_v41   ;;  %v1071_v36 = vsub.f32 %v1007_v31, %v1055_v1 }
 0x316   : > { %v1101_v62 = vmul.f32 1.442695, %v1071_v36  ;;  %v3051_v32 = vpop.eup %2298 }
 0x318   : > { %2300 = vpow2.f32 %v1101_v62 }
 0x319   : > { %v1040_v54 = vpop.xlane.xlu0 %1039  ;;  %v1113_v49 = vpop.permute.xlu2 %1112 }
 0x31a   : > { %v1056_v59 = vmax.f32 %v1008_v43, %v1040_v54  ;;  %v1186_v60 = vsub.f32 %v2795_v53, %v1113_v49 }
 0x31c   : > { %1546 = vst.msk [vmem:[#allocation3 + $0x78] sm:$0xff] %vm539_vm0, %v1056_v59  ;;  %1388 = vperm.xlu2 %2268, %v3034_v37   ;;  %1177 = vperm.xlu1 %2267, %v1055_v1   ;;  %v1203_v57 = vmul.f32 1.442695, %v1186_v60  ;;  %v1072_v53 = vsub.f32 %v1008_v43, %v1056_v59 }
 0x31d   : > { %1182 = vperm.xlu0 %2269, %v1056_v59  }
 0x31e   : > { %2302 = vpow2.f32 %v1203_v57  ;;  %v3053_v16 = vpop.eup %2300 }
 0x321   : > { %v1108_v10 = vpop.permute.xlu1 %1107  ;;  %v1123_v13 = vpop.permute.xlu2 %1122 }
 0x322   : > { %v1185_v35 = vsub.f32 %v2792_v58, %v1108_v10  ;;  %v1103_v58 = vmul.f32 1.442695, %v1072_v53  ;;  %v1188_v22 = vsub.f32 %v2805_v56, %v1123_v13 }
 0x324   : > { %v1201_v28 = vmul.f32 1.442695, %v1185_v35  ;;  %1403 = vperm.xlu2 %2268, %v3042_v26   ;;  %1393 = vperm.xlu1 %2267, %v3039_v12   ;;  %v2303_v8 = vpop.eup %2302  ;;  %v1207_v31 = vmul.f32 1.442695, %v1188_v22 }
 0x325   : > { %1398 = vperm.xlu0 %2269, %v3044_v14  }
 0x326   : > { %2304 = vpow2.f32 %v1201_v28 }
 0x327   : > { %2306 = vpow2.f32 %v1103_v58 }
 0x329   : > { %v1133_v4 = vpop.permute.xlu2 %1132 }
 0x32c   : > { %v2305_v50 = vpop.eup %2304  ;;  %1408 = vperm.xlu1 %2267, %v3049_v30   ;;  %1418 = vperm.xlu2 %2268, %v3053_v16   ;;  %v1118_v45 = vpop.permute.xlu0 %1117 }
 0x32d   : > { %1413 = vperm.xlu0 %2269, %v3051_v32   ;;  %v1187_v47 = vsub.f32 %v2800_v63, %v1118_v45  ;;  %v1442_v19 = vpack.c.bf16 %v2303_v8, %v2305_v50  ;;  %v3060_v11 = vpop.eup %2306  ;;  %v1190_v63 = vsub.f32 %v2815_v3, %v1133_v4 }
 0x32f   : > { %1458 = vmatmul.bf16.vlgmr.msrb.gmra.mxu0 %v1442_v19  ;;  %v1205_v20 = vmul.f32 1.442695, %v1187_v47  ;;  %v1211_v44 = vmul.f32 1.442695, %v1190_v63 }
 0x331   : > { %2308 = vpow2.f32 %v1205_v20 }
 0x332   : > { %2310 = vpow2.f32 %v1207_v31 }
 0x334   : > { %1423 = vperm.xlu1 %2267, %v3060_v11  }
 0x336   : > { %v1128_v40 = vpop.permute.xlu1 %1127  ;;  %v1143_v55 = vpop.permute.xlu2 %1142 }
 0x337   : > { %v2309_v1 = vpop.eup %2308  ;;  %v1189_v42 = vsub.f32 %v2810_v0, %v1128_v40  ;;  %v1192_v51 = vsub.f32 %v2825_v7, %v1143_v55 }
 0x338   : > { %v2311_v6 = vpop.eup %2310 }
 0x339   : > { %v1443_v43 = vpack.c.bf16 %v2311_v6, %v2309_v1  ;;  %v1209_v56 = vmul.f32 1.442695, %v1189_v42  ;;  %v1215_v0 = vmul.f32 1.442695, %v1192_v51 }
 0x33b   : > { %2312 = vpow2.f32 %v1209_v56 }
 0x33c   : > { %2314 = vpow2.f32 %v1211_v44 }
 0x33f   : > { %1463 = vmatmul.bf16.gmra.mxu0 %v1443_v43 }
 0x341   : > { %v2313_v54 = vpop.eup %2312 }
 0x342   : > { %v2315_v48 = vpop.eup %2314 }
 0x343   : > { %v1444_v59 = vpack.c.bf16 %v2315_v48, %v2313_v54 }
 0x346   : > { %v1138_v46 = vpop.permute.xlu1 %1137 }
 0x347   : > { %v1191_v49 = vsub.f32 %v2820_v5, %v1138_v46 }
 0x349   : > { %v1213_v36 = vmul.f32 1.442695, %v1191_v49 }
 0x34b   : > { %2316 = vpow2.f32 %v1213_v36 }
 0x34c   : > { %2318 = vpow2.f32 %v1215_v0 }
 0x34e   : > { %v1158_v60 = vpop.permute.xlu2 %1157 }
 0x34f   : > { %1468 = vmatmul.bf16.gmra.mxu0 %v1444_v59  ;;  %v1195_v58 = vsub.f32 %v2843_v21, %v1158_v60 }
 0x351   : > { %v2317_v3 = vpop.eup %2316 }
 0x352   : > { %v2319_v52 = vpop.eup %2318 }
 0x353   : > { %v1445_v62 = vpack.c.bf16 %v2319_v52, %v2317_v3 }
 0x355   : > { %1265 = vadd.xlane.f32.xlu2 %v2305_v50 }
 0x356   : > { %v1148_v39 = vpop.permute.xlu1 %1147  ;;  %v3069_v28 = vpop.permute.xlu2 %1353 }
 0x357   : > { %1269 = vadd.xlane.f32.xlu0 %v2309_v1  ;;  %v1193_v57 = vsub.f32 %v2830_v9, %v1148_v39  ;;  %v1221_v9 = vmul.f32 1.442695, %v1195_v58 }
 0x359   : > { %v1217_v35 = vmul.f32 1.442695, %v1193_v57 }
 0x35d   : > { %1271 = vadd.xlane.f32.xlu2 %v2311_v6 }
 0x35e   : > { %1267 = vadd.xlane.f32.xlu1 %v2303_v8  ;;  %v1153_v5 = vpop.permute.xlu0 %1152 }
 0x35f   : > { %1277 = vadd.xlane.f32.xlu0 %v2317_v3  ;;  %v1194_v7 = vsub.f32 %v2835_v17, %v1153_v5  ;;  %1473 = vmatmul.bf16.gmra.mxu0 %v1445_v62 }
 0x361   : > { %v1219_v10 = vmul.f32 1.442695, %v1194_v7 }
 0x363   : > { %2320 = vpow2.f32 %v1219_v10 }
 0x364   : > { %2322 = vpow2.f32 %v1217_v35 }
 0x365   : > { %1275 = vadd.xlane.f32.xlu2 %v2315_v48  ;;  %2324 = vpow2.f32 %v1221_v9 }
 0x366   : > { %1273 = vadd.xlane.f32.xlu1 %v2313_v54  ;;  %v1359_v53 = vpop.permute.xlu0 %1358  ;;  %v1173_v50 = vpop.permute.xlu2 %1172 }
 0x367   : > { %v1198_v47 = vsub.f32 %v2878_v15, %v1173_v50  ;;  %v1428_v7 = vmul.f32 0.0, %v1359_v53 }
 0x369   : > { %v2321_v13 = vpop.eup %2320  ;;  %v1227_v31 = vmul.f32 1.442695, %v1198_v47  ;;  %v1235_v47 = vld [vmem:[#allocation4 + $0x10] sm:$0xff] }
 0x36a   : > { %1283 = vadd.xlane.f32.xlu0 %v2321_v13  ;;  %v2323_v8 = vpop.eup %2322 }
 0x36b   : > { %v1446_v45 = vpack.c.bf16 %v2321_v13, %v2323_v8  ;;  %v2325_v21 = vpop.eup %2324 }
 0x36d   : > { %1281 = vadd.xlane.f32.xlu2 %v2323_v8 }
 0x36e   : > { %v1163_v17 = vpop.permute.xlu1 %1162  ;;  %1279 = vadd.xlane.f32.xlu1 %v2319_v52  ;;  %v3083_v3 = vpop.permute.xlu2 %1373 }
 0x36f   : > { %v1196_v19 = vsub.f32 %v2856_v23, %v1163_v17  ;;  %v3074_v22 = vpop.permute.xlu0 %1368  ;;  %1478 = vmatmul.bf16.gmra.mxu0 %v1446_v45  ;;  %v1233_v45 = vld [vmem:[#allocation4] sm:$0xff] }
 0x371   : > { %v1223_v20 = vmul.f32 1.442695, %v1196_v19  ;;  %v1249_v19 = vmul.f32 %v3006_v29, %v1233_v45  ;;  %v1240_v45 = vld [vmem:[#allocation4 + $0x38] sm:$0xff] }
 0x373   : > { %2326 = vpow2.f32 %v1223_v20 }
 0x374   : > { %2328 = vpow2.f32 %v1227_v31 }
 0x376   : > { %v1349_v40 = vpop.permute.xlu1 %1348  ;;  %1285 = vadd.xlane.f32.xlu1 %v2325_v21  ;;  %v3085_v39 = vpop.permute.xlu2 %1388 }
 0x377   : > { %v1168_v1 = vpop.permute.xlu0 %1167  ;;  %v1426_v60 = vmul.f32 0.0, %v1349_v40 }
 0x378   : > { %v1197_v4 = vsub.f32 %v2867_v25, %v1168_v1 }
 0x379   : > { %v2327_v6 = vpop.eup %2326 }
 0x37a   : > { %v1225_v42 = vmul.f32 1.442695, %v1197_v4  ;;  %1287 = vadd.xlane.f32.xlu2 %v2327_v6  ;;  %v2329_v15 = vpop.eup %2328  ;;  %v1447_v43 = vpack.c.bf16 %v2327_v6, %v2325_v21  ;;  %v1251_v21 = vmul.f32 %v2987_v18, %v1235_v47  ;;  %v1236_v4 = vld [vmem:[#allocation4 + $0x18] sm:$0xff]  ;;  %v1234_v6 = vld [vmem:[#allocation4 + $0x8] sm:$0xff] }
 0x37b   : > { %v1250_v29 = vmul.f32 %v2996_v61, %v1234_v6 }
 0x37c   : > { %2330 = vpow2.f32 %v1225_v42  ;;  %v1239_v42 = vld [vmem:[#allocation4 + $0x30] sm:$0xff] }
 0x37e   : > { %v1364_v23 = vpop.permute.xlu1 %1363  ;;  %1291 = vadd.xlane.f32.xlu1 %v2329_v15  ;;  %v3093_v57 = vpop.permute.xlu2 %1403 }
 0x37f   : > { %1483 = vmatmul.bf16.gmra.mxu0 %v1447_v43  ;;  %v3079_v44 = vpop.permute.xlu0 %1383  ;;  %v1429_v8 = vmul.f32 0.0, %v1364_v23 }
 0x382   : > { %v2331_v63 = vpop.eup %2330 }
 0x383   : > { %1289 = vadd.xlane.f32.xlu0 %v2331_v63  ;;  %v1448_v46 = vpack.c.bf16 %v2329_v15, %v2331_v63  ;;  %v1252_v15 = vmul.f32 %v3014_v34, %v1236_v4  ;;  %v1237_v34 = vld [vmem:[#allocation4 + $0x20] sm:$0xff] }
 0x386   : > { %v3077_v56 = vpop.permute.xlu1 %1378  ;;  %v3101_v13 = vpop.permute.xlu2 %1418 }
 0x38e   : > { %v1178_v54 = vpop.permute.xlu1 %1177 }
 0x38f   : > { %v1199_v55 = vsub.f32 %v2886_v27, %v1178_v54  ;;  %v1183_v25 = vpop.permute.xlu0 %1182  ;;  %1488 = vmatmul.bf16.gmra.mxu0 %v1448_v46  ;;  %v1255_v46 = vmul.f32 %v3025_v2, %v1239_v42  ;;  %v1253_v2 = vmul.f32 %v2998_v24, %v1237_v34  ;;  %v1246_v34 = vld [vmem:[#allocation4 + $0x68] sm:$0xff] }
 0x390   : > { %v1200_v48 = vsub.f32 %v2898_v33, %v1183_v25 }
 0x391   : > { %v1229_v49 = vmul.f32 1.442695, %v1199_v55 }
 0x392   : > { %v1231_v59 = vmul.f32 1.442695, %v1200_v48  ;;  %v1238_v48 = vld [vmem:[#allocation4 + $0x28] sm:$0xff] }
 0x393   : > { %2332 = vpow2.f32 %v1229_v49  ;;  %v1254_v61 = vmul.f32 %v3023_v41, %v1238_v48 }
 0x394   : > { %2334 = vpow2.f32 %v1231_v59 }
 0x396   : > { %v3091_v33 = vpop.permute.xlu1 %1393 }
 0x397   : > { %v3095_v5 = vpop.permute.xlu0 %1398 }
 0x399   : > { %v2333_v51 = vpop.eup %2332 }
 0x39a   : > { %v2335_v36 = vpop.eup %2334  ;;  %1293 = vadd.xlane.f32.xlu2 %v2333_v51 }
 0x39b   : > { %1295 = vadd.xlane.f32.xlu0 %v2335_v36  ;;  %v1449_v0 = vpack.c.bf16 %v2335_v36, %v2333_v51 }
 0x39e   : > { %v3099_v58 = vpop.permute.xlu1 %1408 }
 0x39f   : > { %1493 = vmatmul.bf16.gmra.mxu0 %v1449_v0  ;;  %v3103_v9 = vpop.permute.xlu0 %1413 }
 0x3a6   : > { %v3108_v31 = vpop.permute.xlu1 %1423 }
 0x3ac   : > { %v1459_v27 = vpop.f32.mrf.mxu0 }
 0x3ad   : > { %v3087_v52 = vadd.f32 %v1459_v27, %v1426_v60  ;;  %v1242_v60 = vld [vmem:[#allocation4 + $0x48] sm:$0xff] }
 0x3ae   : > { %v1258_v41 = vmul.f32 %v3039_v12, %v1242_v60  ;;  %v1245_v60 = vld [vmem:[#allocation4 + $0x60] sm:$0xff] }
 0x3b4   : > { %v3089_v62 = vpop.f32.mrf.mxu0 }
 0x3bc   : > { %v1464_v10 = vpop.f32.mrf.mxu0 }
 0x3bd   : > { %v3097_v35 = vadd.f32 %v1464_v10, %v1428_v7 }
 0x3c4   : > { %v1466_v50 = vpop.f32.mrf.mxu0 }
 0x3c5   : > { %v3105_v17 = vadd.f32 %v1466_v50, %v1429_v8  ;;  %v1241_v50 = vld [vmem:[#allocation4 + $0x40] sm:$0xff] }
 0x3c8   : > { %v1266_v20 = vpop.xlane.xlu2 %1265 }
 0x3c9   : > { %v1297_v53 = vadd.f32 %v1266_v20, %v1249_v19  ;;  %v1257_v19 = vmul.f32 %v3034_v37, %v1241_v50  ;;  %v1243_v37 = vld [vmem:[#allocation4 + $0x50] sm:$0xff] }
 0x3ca   : > { %v1270_v40 = vpop.xlane.xlu0 %1269 }
 0x3cb   : > { %1314 = vst.msk [vmem:[#allocation4] sm:$0xff] %vm539_vm0, %v1297_v53  ;;  %v1299_v1 = vadd.f32 %v1270_v40, %v1251_v21  ;;  %v1256_v21 = vmul.f32 %v3016_v38, %v1240_v45  ;;  %v1259_v38 = vmul.f32 %v3044_v14, %v1243_v37 }
 0x3cd   : > { %1316 = vst.msk [vmem:[#allocation4 + $0x10] sm:$0xff] %vm539_vm0, %v1299_v1 }
 0x3d0   : > { %v1272_v43 = vpop.xlane.xlu2 %1271 }
 0x3d1   : > { %v1300_v23 = vadd.f32 %v1272_v43, %v1252_v15  ;;  %v1268_v63 = vpop.xlane.xlu1 %1267 }
 0x3d2   : > { %v1298_v54 = vadd.f32 %v1268_v63, %v1250_v29  ;;  %v1278_v18 = vpop.xlane.xlu0 %1277  ;;  %v1566_v55 = vld [vmem:[#allocation4] sm:$0xff] }
 0x3d3   : > { %1317 = vst.msk [vmem:[#allocation4 + $0x18] sm:$0xff] %vm539_vm0, %v1300_v23  ;;  %v1303_v25 = vadd.f32 %v1278_v18, %v1255_v46  ;;  %2336 = vrcp.f32 %v1566_v55  ;;  %v1244_v46 = vld [vmem:[#allocation4 + $0x58] sm:$0xff] }
 0x3d4   : > { %1315 = vst.msk [vmem:[#allocation4 + $0x8] sm:$0xff] %vm539_vm0, %v1298_v54  ;;  %v1568_v49 = vld [vmem:[#allocation4 + $0x10] sm:$0xff]  ;;  %v1260_v48 = vmul.f32 %v3042_v26, %v1244_v46  ;;  %v1261_v26 = vmul.f32 %v3049_v30, %v1245_v60 }
 0x3d5   : > { %1320 = vst.msk [vmem:[#allocation4 + $0x30] sm:$0xff] %vm539_vm0, %v1303_v25  ;;  %2338 = vrcp.f32 %v1568_v49 }
 0x3d8   : > { %v1276_v59 = vpop.xlane.xlu2 %1275 }
 0x3d9   : > { %v2337_v51 = vpop.eup %2336  ;;  %v1302_v36 = vadd.f32 %v1276_v59, %v1254_v61  ;;  %v1274_v0 = vpop.xlane.xlu1 %1273  ;;  %v1262_v59 = vmul.f32 %v3051_v32, %v1246_v34  ;;  %v1433_v34 = vmul.f32 0.0, %v3079_v44 }
 0x3da   : > { %v1301_v27 = vadd.f32 %v1274_v0, %v1253_v2  ;;  %1600 = vperm.xlu0 %2269, %v2337_v51   ;;  %v1569_v7 = vld [vmem:[#allocation4 + $0x18] sm:$0xff] }
 0x3db   : > { %v2339_v10 = vpop.eup %2338  ;;  %1319 = vst.msk [vmem:[#allocation4 + $0x28] sm:$0xff] %vm539_vm0, %v1302_v36  ;;  %2340 = vrcp.f32 %v1569_v7  ;;  %v1567_v8 = vld [vmem:[#allocation4 + $0x8] sm:$0xff] }
 0x3dc   : > { %1318 = vst.msk [vmem:[#allocation4 + $0x20] sm:$0xff] %vm539_vm0, %v1301_v27  ;;  %1610 = vperm.xlu1 %2267, %v2339_v10   ;;  %2342 = vrcp.f32 %v1567_v8  ;;  %v1572_v20 = vld [vmem:[#allocation4 + $0x30] sm:$0xff] }
 0x3dd   : > { %v1284_v24 = vpop.xlane.xlu0 %1283  ;;  %2344 = vrcp.f32 %v1572_v20  ;;  %v1247_v20 = vld [vmem:[#allocation4 + $0x70] sm:$0xff] }
 0x3de   : > { %v1306_v47 = vadd.f32 %v1284_v24, %v1258_v41  ;;  %v1469_v24 = vpop.f32.mrf.mxu0 }
 0x3e0   : > { %1323 = vst.msk [vmem:[#allocation4 + $0x48] sm:$0xff] %vm539_vm0, %v1306_v47  ;;  %v1282_v53 = vpop.xlane.xlu2 %1281 }
 0x3e1   : > { %v2341_v40 = vpop.eup %2340  ;;  %v1305_v1 = vadd.f32 %v1282_v53, %v1257_v19  ;;  %v1280_v4 = vpop.xlane.xlu1 %1279  ;;  %v1248_v53 = vld [vmem:[#allocation4 + $0x78] sm:$0xff] }
 0x3e2   : > { %v2343_v6 = vpop.eup %2342  ;;  %v1304_v42 = vadd.f32 %v1280_v4, %v1256_v21  ;;  %1615 = vperm.xlu0 %2269, %v2341_v40   ;;  %v1571_v12 = vld [vmem:[#allocation4 + $0x28] sm:$0xff]  ;;  %v1263_v21 = vmul.f32 %v3053_v16, %v1247_v20 }
 0x3e3   : > { %1322 = vst.msk [vmem:[#allocation4 + $0x40] sm:$0xff] %vm539_vm0, %v1305_v1  ;;  %1605 = vperm.xlu2 %2268, %v2343_v6   ;;  %2346 = vrcp.f32 %v1571_v12  ;;  %v1570_v15 = vld [vmem:[#allocation4 + $0x20] sm:$0xff]  ;;  %v2345_v29 = vpop.eup %2344  ;;  %v1264_v1 = vmul.f32 %v3060_v11, %v1248_v53 }
 0x3e4   : > { %1321 = vst.msk [vmem:[#allocation4 + $0x38] sm:$0xff] %vm539_vm0, %v1304_v42  ;;  %2348 = vrcp.f32 %v1570_v15 }
 0x3e6   : > { %v1471_v30 = vpop.f32.mrf.mxu0 }
 0x3e7   : > { %v1575_v43 = vld [vmem:[#allocation4 + $0x48] sm:$0xff] }
 0x3e8   : > { %2350 = vrcp.f32 %v1575_v43 }
 0x3e9   : > { %v2347_v23 = vpop.eup %2346  ;;  %v1286_v63 = vpop.xlane.xlu1 %1285 }
 0x3ea   : > { %v2349_v54 = vpop.eup %2348  ;;  %v1307_v18 = vadd.f32 %v1286_v63, %v1259_v38  ;;  %1625 = vperm.xlu1 %2267, %v2347_v23   ;;  %1630 = vperm.xlu0 %2269, %v2345_v29   ;;  %v1574_v55 = vld [vmem:[#allocation4 + $0x40] sm:$0xff]  ;;  %v1427_v23 = vmul.f32 0.0, %v3069_v28 }
 0x3eb   : > { %1620 = vperm.xlu2 %2268, %v2349_v54   ;;  %2352 = vrcp.f32 %v1574_v55  ;;  %v1573_v25 = vld [vmem:[#allocation4 + $0x38] sm:$0xff]  ;;  %v1430_v55 = vmul.f32 0.0, %v3074_v22 }
 0x3ec   : > { %1324 = vst.msk [vmem:[#allocation4 + $0x50] sm:$0xff] %vm539_vm0, %v1307_v18  ;;  %2354 = vrcp.f32 %v1573_v25  ;;  %v1500_v46 = vadd.f32 %v3089_v62, %v1427_v23 }
 0x3ed   : > { %v1288_v49 = vpop.xlane.xlu2 %1287  ;;  %v1503_v25 = vadd.f32 %v1469_v24, %v1430_v55 }
 0x3ee   : > { %v1308_v14 = vadd.f32 %v1288_v49, %v1260_v48  ;;  %v2351_v61 = vpop.eup %2350  ;;  %v1474_v12 = vpop.f32.mrf.mxu0 }
 0x3f0   : > { %1325 = vst.msk [vmem:[#allocation4 + $0x58] sm:$0xff] %vm539_vm0, %v1308_v14 }
 0x3f1   : > { %v2353_v2 = vpop.eup %2352  ;;  %v1292_v51 = vpop.xlane.xlu1 %1291 }
 0x3f2   : > { %v2355_v36 = vpop.eup %2354  ;;  %v1310_v0 = vadd.f32 %v1292_v51, %v1262_v59  ;;  %1640 = vperm.xlu1 %2267, %v2353_v2   ;;  %1645 = vperm.xlu0 %2269, %v2351_v61  }
 0x3f3   : > { %1635 = vperm.xlu2 %2268, %v2355_v36   ;;  %v1576_v27 = vld [vmem:[#allocation4 + $0x50] sm:$0xff] }
 0x3f4   : > { %1327 = vst.msk [vmem:[#allocation4 + $0x68] sm:$0xff] %vm539_vm0, %v1310_v0  ;;  %2356 = vrcp.f32 %v1576_v27  ;;  %v1436_v0 = vmul.f32 0.0, %v3095_v5 }
 0x3f6   : > { %v1290_v7 = vpop.xlane.xlu0 %1289  ;;  %v1476_v43 = vpop.f32.mrf.mxu0 }
 0x3f7   : > { %v1309_v10 = vadd.f32 %v1290_v7, %v1261_v26  ;;  %v1577_v8 = vld [vmem:[#allocation4 + $0x58] sm:$0xff]  ;;  %v1506_v62 = vadd.f32 %v1476_v43, %v1433_v34 }
 0x3f8   : > { %2358 = vrcp.f32 %v1577_v8  ;;  %v1439_v8 = vmul.f32 0.0, %v3103_v9 }
 0x3f9   : > { %1326 = vst.msk [vmem:[#allocation4 + $0x60] sm:$0xff] %vm539_vm0, %v1309_v10  ;;  %v1432_v10 = vmul.f32 0.0, %v3077_v56  ;;  %v1434_v56 = vmul.f32 0.0, %v3085_v39  ;;  %v1438_v39 = vmul.f32 0.0, %v3099_v58 }
 0x3fa   : > { %v2357_v32 = vpop.eup %2356 }
 0x3fb   : > { %1650 = vperm.xlu2 %2268, %v2357_v32   ;;  %v1579_v41 = vld [vmem:[#allocation4 + $0x68] sm:$0xff]  ;;  %v1505_v5 = vadd.f32 %v1474_v12, %v1432_v10 }
 0x3fc   : > { %2360 = vrcp.f32 %v1579_v41 }
 0x3fe   : > { %v2359_v50 = vpop.eup %2358  ;;  %v1479_v16 = vpop.f32.mrf.mxu0 }
 0x3ff   : > { %1655 = vperm.xlu1 %2267, %v2359_v50   ;;  %v1507_v9 = vadd.f32 %v1479_v16, %v1434_v56 }
 0x400   : > { %v1578_v45 = vld [vmem:[#allocation4 + $0x60] sm:$0xff] }
 0x401   : > { %2362 = vrcp.f32 %v1578_v45 }
 0x402   : > { %v2361_v47 = vpop.eup %2360 }
 0x403   : > { %1665 = vperm.xlu2 %2268, %v2361_v47  }
 0x406   : > { %v1481_v11 = vpop.f32.mrf.mxu0 }
 0x407   : > { %v2363_v19 = vpop.eup %2362 }
 0x408   : > { %1660 = vperm.xlu0 %2269, %v2363_v19  }
 0x40d   : > { %v1294_v40 = vpop.xlane.xlu2 %1293 }
 0x40e   : > { %v1311_v4 = vadd.f32 %v1294_v40, %v1263_v21  ;;  %v1296_v6 = vpop.xlane.xlu0 %1295  ;;  %v1484_v63 = vpop.f32.mrf.mxu0 }
 0x40f   : > { %v1312_v42 = vadd.f32 %v1296_v6, %v1264_v1  ;;  %v1509_v60 = vadd.f32 %v1484_v63, %v1436_v0  ;;  %v1437_v1 = vmul.f32 0.0, %v3093_v57  ;;  %v1440_v57 = vmul.f32 0.0, %v3101_v13 }
 0x410   : > { %1328 = vst.msk [vmem:[#allocation4 + $0x70] sm:$0xff] %vm539_vm0, %v1311_v4 }
 0x411   : > { %1329 = vst.msk [vmem:[#allocation4 + $0x78] sm:$0xff] %vm539_vm0, %v1312_v42 }
 0x416   : > { %v1486_v48 = vpop.f32.mrf.mxu0 }
 0x417   : > { %v1580_v15 = vld [vmem:[#allocation4 + $0x70] sm:$0xff]  ;;  %v1510_v4 = vadd.f32 %v1486_v48, %v1437_v1 }
 0x418   : > { %2364 = vrcp.f32 %v1580_v15  ;;  %v1581_v37 = vld [vmem:[#allocation4 + $0x78] sm:$0xff] }
 0x419   : > { %2366 = vrcp.f32 %v1581_v37 }
 0x41e   : > { %v2365_v29 = vpop.eup %2364  ;;  %v1489_v36 = vpop.f32.mrf.mxu0 }
 0x41f   : > { %v2367_v38 = vpop.eup %2366  ;;  %1670 = vperm.xlu1 %2267, %v2365_v29   ;;  %v1441_v29 = vmul.f32 0.0, %v3108_v31 }
 0x420   : > { %1675 = vperm.xlu0 %2269, %v2367_v38  }
 0x43d   : > { %v1606_v54 = vpop.permute.xlu2 %1605 }
 0x43e   : > { %v1679_v18 = vmul.f32 %v1606_v54, %v1500_v46 }
 0x440   : > { %1695 = vst [vmem:[%s3144_s27 + $0x8] sm:$0xff] %v1679_v18 }
 0x445   : > { %v1621_v49 = vpop.permute.xlu2 %1620 }
 0x446   : > { %v1682_v28 = vmul.f32 %v1621_v49, %v1503_v25 }
 0x448   : > { %1698 = vst [vmem:[%s3144_s27 + $0x20] sm:$0xff] %v1682_v28 }
 0x44c   : > { %v1601_v14 = vpop.permute.xlu0 %1600 }
 0x44d   : > { %v1678_v61 = vmul.f32 %v1601_v14, %v3087_v52  ;;  %v1636_v59 = vpop.permute.xlu2 %1635  ;;  %v1431_v52 = vmul.f32 0.0, %v3083_v3  ;;  %v1435_v3 = vmul.f32 0.0, %v3091_v33  ;;  %v1511_v33 = vadd.f32 %v1489_v36, %v1438_v39 }
 0x44e   : > { %v1685_v2 = vmul.f32 %v1636_v59, %v1506_v62  ;;  %v1611_v51 = vpop.permute.xlu1 %1610 }
 0x44f   : > { %1694 = vst [vmem:[%s3144_s27] sm:$0xff] %v1678_v61  ;;  %v1680_v22 = vmul.f32 %v1611_v51, %v3097_v35  ;;  %v1491_v35 = vpop.f32.mrf.mxu0  ;;  %v1504_v32 = vadd.f32 %v1471_v30, %v1431_v52  ;;  %v1508_v30 = vadd.f32 %v1481_v11, %v1435_v3 }
 0x450   : > { %1701 = vst [vmem:[%s3144_s27 + $0x38] sm:$0xff] %v1685_v2  ;;  %v1512_v41 = vadd.f32 %v1491_v35, %v1439_v8 }
 0x451   : > { %1696 = vst [vmem:[%s3144_s27 + $0x10] sm:$0xff] %v1680_v22 }
 0x454   : > { %v1616_v27 = vpop.permute.xlu0 %1615 }
 0x455   : > { %v1681_v44 = vmul.f32 %v1616_v27, %v3105_v17  ;;  %v1651_v26 = vpop.permute.xlu2 %1650 }
 0x456   : > { %v1688_v7 = vmul.f32 %v1651_v26, %v1509_v60 }
 0x457   : > { %1697 = vst [vmem:[%s3144_s27 + $0x18] sm:$0xff] %v1681_v44  ;;  %v1494_v37 = vpop.f32.mrf.mxu0 }
 0x458   : > { %1704 = vst [vmem:[%s3144_s27 + $0x50] sm:$0xff] %v1688_v7  ;;  %v1513_v58 = vadd.f32 %v1494_v37, %v1440_v57 }
 0x45c   : > { %v1626_v50 = vpop.permute.xlu1 %1625  ;;  %v1631_v24 = vpop.permute.xlu0 %1630 }
 0x45d   : > { %v1683_v17 = vmul.f32 %v1626_v50, %v1504_v32  ;;  %v1684_v45 = vmul.f32 %v1631_v24, %v1505_v5  ;;  %v1666_v47 = vpop.permute.xlu2 %1665 }
 0x45e   : > { %v1691_v19 = vmul.f32 %v1666_v47, %v1512_v41 }
 0x45f   : > { %1699 = vst [vmem:[%s3144_s27 + $0x28] sm:$0xff] %v1683_v17  ;;  %v1496_v43 = vpop.f32.mrf.mxu0 }
 0x460   : > { %1700 = vst [vmem:[%s3144_s27 + $0x30] sm:$0xff] %v1684_v45  ;;  %v1514_v38 = vadd.f32 %v1496_v43, %v1441_v29 }
 0x461   : > { %1707 = vst [vmem:[%s3144_s27 + $0x68] sm:$0xff] %v1691_v19 }
 0x464   : > { %v1641_v20 = vpop.permute.xlu1 %1640  ;;  %v1646_v53 = vpop.permute.xlu0 %1645 }
 0x465   : > { %v1686_v21 = vmul.f32 %v1641_v20, %v1507_v9  ;;  %v1687_v40 = vmul.f32 %v1646_v53, %v1508_v30 }
 0x467   : > { %1702 = vst [vmem:[%s3144_s27 + $0x40] sm:$0xff] %v1686_v21 }
 0x468   : > { %1703 = vst [vmem:[%s3144_s27 + $0x48] sm:$0xff] %v1687_v40 }
 0x471   : > { %v1656_v6 = vpop.permute.xlu1 %1655 }
 0x472   : > { %v1689_v42 = vmul.f32 %v1656_v6, %v1510_v4 }
 0x474   : > { %1705 = vst [vmem:[%s3144_s27 + $0x58] sm:$0xff] %v1689_v42 }
 0x47a   : > { %v1661_v12 = vpop.permute.xlu0 %1660 }
 0x47b   : > { %v1690_v15 = vmul.f32 %v1661_v12, %v1511_v33 }
 0x47d   : > { %1706 = vst [vmem:[%s3144_s27 + $0x60] sm:$0xff] %v1690_v15 }
 0x491   : > { %v1671_v16 = vpop.permute.xlu1 %1670 }
 0x492   : > { %v1692_v11 = vmul.f32 %v1671_v16, %v1513_v58  ;;  %v1676_v23 = vpop.permute.xlu0 %1675 }
 0x493   : > { %v1693_v63 = vmul.f32 %v1676_v23, %v1514_v38 }
 0x494   : > { %1708 = vst [vmem:[%s3144_s27 + $0x70] sm:$0xff] %v1692_v11 }
 0x495   : > { %1709 = vst [vmem:[%s3144_s27 + $0x78] sm:$0xff] %v1693_v63 }
 0x496   : > { %2485 = shalt.err (!%p2482_p0)
}
 0x497   : > { %s2558_s9 = smov 128   ;;  %s2559_s19 = smov 8  }
 0x498   : > { %2188 = dma.vmem_to_hbm [thread:$0]  (%p2660_p5), %s1726_s8, 2048, %s1728_s25, %s1711_s18, %s2558_s9, %s2558_s9, %s2559_s19  }
 0x499 PF: > { %s1742_s21 = sand.u32 1, %s2528_s15   ;;  %p2202_p3 = pnand %p1857_p11, %p2630_p6 }
 0x49a   : > { %s1743_s23 = scalar_lea.sflag [#allocation8], %s1742_s21 }
 0x49b   : > { %p2203_p7 = pneg %p2202_p3 }
 0x49d   : > { %2523 = dma.done.wait (%p2203_p7), %s1743_s23, 2048  }
 0x49e   : > { %2525 = vsyncadd (%p2203_p7), %s1743_s23, 4294965248  ;;  %s23_s20 = sadd.s32 1, %s2548_s20   ;;  %s3235_s28 = sld [smem:[#allocation17_spill]] }
 0x49f   : > { %p20_p9 = scmp.ge.s32.totalorder %s23_s20, 4   ;;  %s3236_s17 = sld [smem:[#allocation20_spill]] }
 0x4a0   : > { %s3237_s18 = sld [smem:[#allocation18_spill]]  ;;  %s3239_s15 = smov %s2532_s16 }
 0x4a1   : > { %s3238_s19 = sld [smem:[#allocation19_spill]]  ;;  %22 = sbr.rel (!%p20_p9) target bundleno = 10 (0xa), region = 106 }
 0x4a4   : > { %s3240_s16 = smov %s3235_s28 }
 0x4a6   :  { %1749 = vsyncpa [#allocation7], 1 }
 0x4a7   :  { %1751 = vsyncpa [#allocation7 + $0x1], 1 }
 0x4a8   :  { %1752 = vsyncpa [#allocation10], 1 }
 0x4a9   :  { %1754 = vsyncpa [#allocation10 + $0x1], 1 }
 0x4aa   :  { %1755 = vsyncpa [#allocation8], 1 }
 0x4ab   :  { %1757 = vsyncpa [#allocation8 + $0x1], 1 }

</bundles_post_ra>
